<compile_context>
chip_gen: v7x
topology: tpu7x:2x2x1
jax: 0.10.0
libtpu: 0.0.40
codegen_flags: <defaults>
</compile_context>

<pallas_src>
import functools

import jax
import jax.numpy as jnp
from jax.experimental import pallas as pl
from jax.experimental.pallas import tpu as pltpu

_BN_EPS = 1e-5


# ----------------------------------------------------------------------------
# Pallas kernels
# ----------------------------------------------------------------------------
def _fused_conv_kernel(*refs, n, h, w, cin_list, k3, has_residual, has_bias,
                       apply_bn_relu, bn_pair):
    """Fused [3x3 | 1x1] conv (+bias) [+ BatchNorm(batch stats) + ReLU].

    Ref order: inputs (one per entry of cin_list), [residual], weight, [bias],
    output, [halo scratch (k3 only)].
      inputs (k3):  (n, h, w, ci)   bf16
      inputs (1x1): (m, ci)         bf16
      weight:       (taps*sum(ci), cout) bf16
      bias:         (1, cout) f32
      output:       (m, cout)  (bf16 intermediates)
      scratch:      (n, h+2, w+2, sum(ci)) f32 halo buffer
    """
    it = iter(refs)
    x_refs = [next(it) for _ in cin_list]
    r_ref = next(it) if has_residual else None
    w_ref = next(it)
    b_ref = next(it) if has_bias else None
    o_ref = next(it)
    pad_ref = next(it) if k3 else None

    m = n * h * w
    ctot = sum(cin_list)

    vals = [ref[...] for ref in x_refs]
    if has_residual:                       # residual fused into the conv input
        vals[0] = vals[0] + r_ref[...]
    val = vals[0] if len(vals) == 1 else jnp.concatenate(vals, axis=-1)

    if k3:
        # In-kernel halo: zero the scratch, write the block into the interior,
        # then build one im2col tile from 9 shifted windows (single matmul).
        pad_ref[...] = jnp.zeros(pad_ref.shape, pad_ref.dtype)
        pad_ref[:, 1:h + 1, 1:w + 1, :] = val.astype(jnp.float32)
        patches = jnp.concatenate(
            [pad_ref[:, dy:dy + h, dx:dx + w, :].reshape(m, ctot)
             for dy in range(3) for dx in range(3)], axis=-1)
    else:
        patches = val                       # 1x1 (depth-mix) path

    acc = jnp.dot(patches.astype(jnp.bfloat16), w_ref[...],
                  preferred_element_type=jnp.float32)
    if has_bias:
        acc = acc + b_ref[...]

    if apply_bn_relu:
        # Single-pass training-mode BatchNorm stats (gamma=1, beta=0).
        cnt = float(m)
        s = jnp.sum(acc, axis=0, keepdims=True)
        sq = jnp.sum(acc * acc, axis=0, keepdims=True)
        if bn_pair:                         # BN3d: pool depth0/depth1 channels
            half = acc.shape[-1] // 2
            s = s[:, :half] + s[:, half:]
            sq = sq[:, :half] + sq[:, half:]
            cnt = 2.0 * m
        mean = s / cnt
        var = jnp.maximum(sq / cnt - mean * mean, 0.0)
        scale = jax.lax.rsqrt(var + _BN_EPS)
        shift = -mean * scale
        if bn_pair:
            scale = jnp.concatenate([scale, scale], axis=-1)
            shift = jnp.concatenate([shift, shift], axis=-1)
        acc = jnp.maximum(acc * scale + shift, 0.0)

    o_ref[...] = acc.astype(o_ref.dtype)


def _pred_head_kernel(x_ref, wh_ref, wo_ref, bo_ref, o_ref, pad_ref,
                      *, n, h, w, c):
    """One prediction head fully fused: conv3x3+BN+ReLU then conv3x3(+bias).

    x_ref:  (m, 2c) bf16 fusion output (channels [:c]=region, [c:]=edge);
            the head index (grid step) selects its half in-kernel.
    wh_ref: (1, 9c, c) bf16, wo_ref: (1, 9c, 1) bf16, bo_ref: (1, 1, 1) f32.
    o_ref:  (m, 1) f32 row-block of the stacked (2m, 1) output.
    pad_ref:(n, h+2, w+2, c) f32 halo scratch (reused for both convs).
    """
    m = n * h * w
    i = pl.program_id(0)
    x = jnp.where(i == 0, x_ref[:, :c], x_ref[:, c:])            # (m, c) bf16

    pad_ref[...] = jnp.zeros(pad_ref.shape, pad_ref.dtype)

    def im2col(v2d):
        pad_ref[:, 1:h + 1, 1:w + 1, :] = v2d.reshape(n, h, w, c).astype(
            jnp.float32)
        return jnp.concatenate(
            [pad_ref[:, dy:dy + h, dx:dx + w, :].reshape(m, c)
             for dy in range(3) for dx in range(3)],
            axis=-1).astype(jnp.bfloat16)

    hidden = jnp.dot(im2col(x), wh_ref[0], preferred_element_type=jnp.float32)
    s = jnp.sum(hidden, axis=0, keepdims=True)
    sq = jnp.sum(hidden * hidden, axis=0, keepdims=True)
    mean = s / m
    var = jnp.maximum(sq / m - mean * mean, 0.0)
    hidden = jnp.maximum((hidden - mean) * jax.lax.rsqrt(var + _BN_EPS), 0.0)

    y = jnp.dot(im2col(hidden), wo_ref[0], preferred_element_type=jnp.float32)
    o_ref[...] = y + bo_ref[0]


# ----------------------------------------------------------------------------
# Kernel wrappers
# ----------------------------------------------------------------------------
def _full_block(a):
    nd = a.ndim
    return pl.BlockSpec(a.shape, lambda i, nd=nd: (0,) * nd)


def fused_conv(inputs, weight, *, bias=None, residual=None, k3=True,
               bn_pair=False, apply_bn_relu=True, out_dtype=jnp.bfloat16):
    """Fused conv(+BN+ReLU). `inputs` are NHWC tensors concatenated on channel
    in-kernel (no HBM concat).  k3=True -> 3x3 same conv, else 1x1."""
    n, h, w, _ = inputs[0].shape
    cin_list = tuple(int(t.shape[-1]) for t in inputs)
    ctot = sum(cin_list)
    cout = int(weight.shape[-1])
    m = n * h * w

    if not k3:   # 1x1 path works on flat (m, ci) views (free XLA reshapes)
        inputs = [t.reshape(m, ci) for t, ci in zip(inputs, cin_list)]
        if residual is not None:
            residual = residual.reshape(m, cin_list[0])

    args = list(inputs)
    if residual is not None:
        args.append(residual)
    args.append(weight)
    if bias is not None:
        args.append(bias)

    scratch = ([pltpu.VMEM((n, h + 2, w + 2, ctot), jnp.float32)]
               if k3 else [])

    kernel = functools.partial(
        _fused_conv_kernel, n=n, h=h, w=w, cin_list=cin_list, k3=k3,
        has_residual=residual is not None, has_bias=bias is not None,
        apply_bn_relu=apply_bn_relu, bn_pair=bn_pair)

    out = pl.pallas_call(
        kernel,
        out_shape=jax.ShapeDtypeStruct((m, cout), out_dtype),
        grid=(1,),
        in_specs=[_full_block(a) for a in args],
        out_specs=pl.BlockSpec((m, cout), lambda i: (0, 0)),
        scratch_shapes=scratch,
    )(*args)
    return out.reshape(n, h, w, cout)


def pred_heads(g2d, wh, wo, bo, *, n, h, w, c):
    """Both prediction heads in one pallas_call (2-step parallel grid)."""
    m = n * h * w
    return pl.pallas_call(
        functools.partial(_pred_head_kernel, n=n, h=h, w=w, c=c),
        out_shape=jax.ShapeDtypeStruct((2 * m, 1), jnp.float32),
        grid=(2,),
        in_specs=[
            pl.BlockSpec((m, 2 * c), lambda i: (0, 0)),
            pl.BlockSpec((1, 9 * c, c), lambda i: (i, 0, 0)),
            pl.BlockSpec((1, 9 * c, 1), lambda i: (i, 0, 0)),
            pl.BlockSpec((1, 1, 1), lambda i: (i, 0, 0)),
        ],
        out_specs=pl.BlockSpec((m, 1), lambda i: (i, 0)),
        scratch_shapes=[pltpu.VMEM((n, h + 2, w + 2, c), jnp.float32)],
        compiler_params=pltpu.CompilerParams(
            dimension_semantics=("parallel",)),
    )(g2d, wh, wo, bo)


# ----------------------------------------------------------------------------
# JAX glue (tiny / gather-heavy ops)
# ----------------------------------------------------------------------------
def upsample_bilinear_align_corners(x, out_hw):
    n, h, w, c = x.shape
    ho, wo = out_hw

    def coords(n_in, n_out):
        if n_out == 1:
            return jnp.zeros((n_out,), jnp.float32)
        return jnp.arange(n_out, dtype=jnp.float32) * (n_in - 1) / (n_out - 1)

    ys, xs = coords(h, ho), coords(w, wo)
    y0 = jnp.floor(ys).astype(jnp.int32)
    y1 = jnp.minimum(y0 + 1, h - 1)
    x0 = jnp.floor(xs).astype(jnp.int32)
    x1 = jnp.minimum(x0 + 1, w - 1)
    wy = (ys - y0.astype(jnp.float32))[None, :, None, None]
    wx = (xs - x0.astype(jnp.float32))[None, None, :, None]

    def gather(yi, xi):
        return x[:, yi, :, :][:, :, xi, :]

    top = gather(y0, x0) * (1.0 - wx) + gather(y0, x1) * wx
    bot = gather(y1, x0) * (1.0 - wx) + gather(y1, x1) * wx
    return top * (1.0 - wy) + bot * wy


# ----------------------------------------------------------------------------
# SplitFusion forward
# ----------------------------------------------------------------------------
def split_fusion_forward(x, rf, rp, bf, bp, p):
    """Port of SplitFusion.forward (inputs/outputs in PyTorch NCHW layout)."""
    del bf  # unused by the reference forward
    nhwc = lambda t: jnp.transpose(t, (0, 2, 3, 1)).astype(jnp.float32)
    x, rf, rp, bp = nhwc(x), nhwc(rf), nhwc(rp), nhwc(bp)
    n, h, w, c = x.shape
    m = n * h * w

    rp = 1.0 - jax.nn.sigmoid(rp)
    rp = upsample_bilinear_align_corners(rp, (h, w))
    rf = upsample_bilinear_align_corners(rf, (h, w))
    bp = upsample_bilinear_align_corners(bp, (h, w))

    to_bf16 = lambda t: t.astype(jnp.bfloat16)
    x, rf, rp, bp = to_bf16(x), to_bf16(rf), to_bf16(rp), to_bf16(bp)

    # reverse_conv(cat([x, rp]))  /  add_conv(xr + rf)  /  edge / cat convs.
    xr = fused_conv([x, rp], p["reverse_w"])
    xa = fused_conv([xr], p["add_w"], residual=rf)
    eg = fused_conv([xa], p["edge_w"])
    eg = fused_conv([eg, bp], p["cat_w"])

    # fusion block in depth-in-channels layout: cols [:c]=depth0, [c:]=depth1.
    g = fused_conv([xa, eg], p["f1_w"], bias=p["f1_b"], k3=False, bn_pair=True)
    g = fused_conv([g], p["f2_w"], bias=p["f2_b"], bn_pair=True)
    g = fused_conv([g], p["f3_w"], bias=p["f3_b"], k3=False, bn_pair=True)
    g = fused_conv([g], p["f4_w"], bias=p["f4_b"], bn_pair=True)
    g2d = g.reshape(m, 2 * c)

    # prediction heads (region on depth0, edge on depth1) in one fused call.
    preds = pred_heads(g2d, p["pred_hidden_w"], p["pred_out_w"],
                       p["pred_out_b"], n=n, h=h, w=w, c=c)
    preds = preds.reshape(2, n, h, w).astype(jnp.float32)

    x_out = g2d[:, :c].reshape(n, h, w, c)
    edge_out = g2d[:, c:].reshape(n, h, w, c)
    nchw = lambda t: jnp.transpose(t, (0, 3, 1, 2)).astype(jnp.float32)
    return (nchw(x_out), preds[0][:, None], nchw(edge_out), preds[1][:, None])


# ----------------------------------------------------------------------------
# Parameter construction (shapes follow the PyTorch __init__; pre-packed for
# the single-matmul kernel layouts)
# ----------------------------------------------------------------------------
def _depth_mix_weight(w3):
    """Conv3d(3,1,1) taps (3,c,c) -> (2c,2c) block weight [[w1,w0],[w2,w1]]."""
    return jnp.concatenate([
        jnp.concatenate([w3[1], w3[0]], axis=1),
        jnp.concatenate([w3[2], w3[1]], axis=1)], axis=0)


def _spatial_blockdiag_weight(w9):
    """Conv3d(1,3,3) taps (9,c,c) -> block-diag (9*2c, 2c) shared over depth."""
    t, c, _ = w9.shape
    z = jnp.zeros((t, c, c), w9.dtype)
    top = jnp.concatenate([w9, z], axis=2)   # depth-0 input rows
    bot = jnp.concatenate([z, w9], axis=2)   # depth-1 input rows
    return jnp.concatenate([top, bot], axis=1).reshape(t * 2 * c, 2 * c)


def _dup_bias(b):
    return jnp.concatenate([b, b])[None, :]  # (c,) -> (1, 2c)


def init_params(key, c):
    keys = iter(jax.random.split(key, 20))

    def w(shape):
        return (0.1 * jax.random.normal(next(keys), shape,
                                        jnp.float32)).astype(jnp.bfloat16)

    def b(shape):
        return 0.1 * jax.random.normal(next(keys), shape, jnp.float32)

    p = {
        "reverse_w": w((9 * (c + 1), c)),   # Conv2d(c+1, c, 3) bias=False
        "add_w": w((9 * c, c)),
        "edge_w": w((9 * c, c)),
        "cat_w": w((9 * (c + 1), c)),
        "pred_hidden_w": w((2, 9 * c, c)),  # region / edge hidden convs
        "pred_out_w": w((2, 9 * c, 1)),
        "pred_out_b": b((2, 1, 1)),
    }
    p["f1_w"] = _depth_mix_weight(w((3, c, c)));        p["f1_b"] = _dup_bias(b((c,)))
    p["f2_w"] = _spatial_blockdiag_weight(w((9, c, c))); p["f2_b"] = _dup_bias(b((c,)))
    p["f3_w"] = _depth_mix_weight(w((3, c, c)));        p["f3_b"] = _dup_bias(b((c,)))
    p["f4_w"] = _spatial_blockdiag_weight(w((9, c, c))); p["f4_b"] = _dup_bias(b((c,)))
    # BatchNorm affine params are the PyTorch defaults (gamma=1, beta=0) and
    # are folded into the fused kernels directly (training-mode batch stats).
    return p


# ----------------------------------------------------------------------------
if __name__ == "__main__":
    N, C, H, W = 2, 32, 16, 16        # small test shapes (channel=32)
    HS, WS = 8, 8                     # low-res side inputs (rf / rp / bp)

    root = jax.random.PRNGKey(0)
    kx, krf, krp, kbf, kbp, kparam = jax.random.split(root, 6)
    x = jax.random.normal(kx, (N, C, H, W), jnp.float32)
    rf = jax.random.normal(krf, (N, C, HS, WS), jnp.float32)
    rp = jax.random.normal(krp, (N, 1, HS, WS), jnp.float32)
    bf_in = jax.random.normal(kbf, (N, C, HS, WS), jnp.float32)  # unused (as in PyTorch)
    bp = jax.random.normal(kbp, (N, 1, HS, WS), jnp.float32)
    params = init_params(kparam, C)

    fwd = jax.jit(split_fusion_forward)
    outs = fwd(x, rf, rp, bf_in, bp, params)
    jax.block_until_ready(outs)
    x_out, x_pred, edge_out, edge_pred = outs

    assert x_out.shape == (N, C, H, W), x_out.shape
    assert x_pred.shape == (N, 1, H, W), x_pred.shape
    assert edge_out.shape == (N, C, H, W), edge_out.shape
    assert edge_pred.shape == (N, 1, H, W), edge_pred.shape
    for t in outs:
        assert bool(jnp.all(jnp.isfinite(t)))
    print("KERNEL_OK")
</pallas_src>

<mosaic_0001>
module attributes {stable_mosaic.version = 11 : i64} {
  func.func @_fused_conv_kernel(%arg0: i32, %arg1: memref<2x16x16x32xbf16, #tpu.memory_space<vmem>>, %arg2: memref<2x16x16x1xbf16, #tpu.memory_space<vmem>>, %arg3: memref<297x32xbf16, #tpu.memory_space<vmem>>, %arg4: memref<512x32xbf16, #tpu.memory_space<vmem>>, %arg5: memref<2x18x18x33xf32, #tpu.memory_space<vmem>>) attributes {dimension_semantics = [#tpu.dimension_semantics<arbitrary>], iteration_bounds = array<i64: 1>, scalar_prefetch = 0 : i64, scratch_operands = 1 : i64, tpu.core_type = #tpu.core_type<tc>, window_params = [{pipeline_mode = #tpu.pipeline_mode<synchronous>, transform_indices = @transform_0, window_bounds = array<i64: 2, 16, 16, 32>}, {pipeline_mode = #tpu.pipeline_mode<synchronous>, transform_indices = @transform_1, window_bounds = array<i64: 2, 16, 16, 1>}, {pipeline_mode = #tpu.pipeline_mode<synchronous>, transform_indices = @transform_2, window_bounds = array<i64: 297, 32>}, {pipeline_mode = #tpu.pipeline_mode<synchronous>, transform_indices = @transform_3, window_bounds = array<i64: 512, 32>}]} {
    %c0 = arith.constant 0 : index
    %c0_0 = arith.constant 0 : index
    %c0_1 = arith.constant 0 : index
    %c0_2 = arith.constant 0 : index
    %0 = vector.load %arg1[%c0, %c0_0, %c0_1, %c0_2] : memref<2x16x16x32xbf16, #tpu.memory_space<vmem>>, vector<2x16x16x32xbf16>
    %c0_3 = arith.constant 0 : index
    %c0_4 = arith.constant 0 : index
    %c0_5 = arith.constant 0 : index
    %c0_6 = arith.constant 0 : index
    %1 = vector.load %arg2[%c0_3, %c0_4, %c0_5, %c0_6] : memref<2x16x16x1xbf16, #tpu.memory_space<vmem>>, vector<2x16x16x1xbf16>
    %2 = tpu.concatenate %0, %1 in 3 : vector<2x16x16x32xbf16>, vector<2x16x16x1xbf16> -> vector<2x16x16x33xbf16>
    %cst = arith.constant 0.000000e+00 : f32
    %3 = vector.broadcast %cst : f32 to vector<2x18x18x33xf32>
    %c0_7 = arith.constant 0 : index
    %c0_8 = arith.constant 0 : index
    %c0_9 = arith.constant 0 : index
    %c0_10 = arith.constant 0 : index
    %4 = vector.load %arg5[%c0_7, %c0_8, %c0_9, %c0_10] : memref<2x18x18x33xf32, #tpu.memory_space<vmem>>, vector<2x18x18x33xf32>
    tpu.vector_store %arg5[%c0_7, %c0_8, %c0_9, %c0_10], %3 {strides = array<i32>} : memref<2x18x18x33xf32, #tpu.memory_space<vmem>>, vector<2x18x18x33xf32>,
    %5 = arith.extf %2 : vector<2x16x16x33xbf16> to vector<2x16x16x33xf32>
    %c0_11 = arith.constant 0 : index
    %c1 = arith.constant 1 : index
    %c1_12 = arith.constant 1 : index
    %c0_13 = arith.constant 0 : index
    %6 = vector.load %arg5[%c0_11, %c1, %c1_12, %c0_13] : memref<2x18x18x33xf32, #tpu.memory_space<vmem>>, vector<2x16x16x33xf32>
    tpu.vector_store %arg5[%c0_11, %c1, %c1_12, %c0_13], %5 {strides = array<i32>} : memref<2x18x18x33xf32, #tpu.memory_space<vmem>>, vector<2x16x16x33xf32>,
    %c0_14 = arith.constant 0 : index
    %c0_15 = arith.constant 0 : index
    %c0_16 = arith.constant 0 : index
    %c0_17 = arith.constant 0 : index
    %7 = vector.load %arg5[%c0_14, %c0_15, %c0_16, %c0_17] : memref<2x18x18x33xf32, #tpu.memory_space<vmem>>, vector<2x16x16x33xf32>
    %8 = vector.shape_cast %7 : vector<2x16x16x33xf32> to vector<512x33xf32>
    %c0_18 = arith.constant 0 : index
    %c0_19 = arith.constant 0 : index
    %c1_20 = arith.constant 1 : index
    %c0_21 = arith.constant 0 : index
    %9 = vector.load %arg5[%c0_18, %c0_19, %c1_20, %c0_21] : memref<2x18x18x33xf32, #tpu.memory_space<vmem>>, vector<2x16x16x33xf32>
    %10 = vector.shape_cast %9 : vector<2x16x16x33xf32> to vector<512x33xf32>
    %c0_22 = arith.constant 0 : index
    %c0_23 = arith.constant 0 : index
    %c2 = arith.constant 2 : index
    %c0_24 = arith.constant 0 : index
    %11 = vector.load %arg5[%c0_22, %c0_23, %c2, %c0_24] : memref<2x18x18x33xf32, #tpu.memory_space<vmem>>, vector<2x16x16x33xf32>
    %12 = vector.shape_cast %11 : vector<2x16x16x33xf32> to vector<512x33xf32>
    %c0_25 = arith.constant 0 : index
    %c1_26 = arith.constant 1 : index
    %c0_27 = arith.constant 0 : index
    %c0_28 = arith.constant 0 : index
    %13 = vector.load %arg5[%c0_25, %c1_26, %c0_27, %c0_28] : memref<2x18x18x33xf32, #tpu.memory_space<vmem>>, vector<2x16x16x33xf32>
    %14 = vector.shape_cast %13 : vector<2x16x16x33xf32> to vector<512x33xf32>
    %c0_29 = arith.constant 0 : index
    %c1_30 = arith.constant 1 : index
    %c1_31 = arith.constant 1 : index
    %c0_32 = arith.constant 0 : index
    %15 = vector.load %arg5[%c0_29, %c1_30, %c1_31, %c0_32] : memref<2x18x18x33xf32, #tpu.memory_space<vmem>>, vector<2x16x16x33xf32>
    %16 = vector.shape_cast %15 : vector<2x16x16x33xf32> to vector<512x33xf32>
    %c0_33 = arith.constant 0 : index
    %c1_34 = arith.constant 1 : index
    %c2_35 = arith.constant 2 : index
    %c0_36 = arith.constant 0 : index
    %17 = vector.load %arg5[%c0_33, %c1_34, %c2_35, %c0_36] : memref<2x18x18x33xf32, #tpu.memory_space<vmem>>, vector<2x16x16x33xf32>
    %18 = vector.shape_cast %17 : vector<2x16x16x33xf32> to vector<512x33xf32>
    %c0_37 = arith.constant 0 : index
    %c2_38 = arith.constant 2 : index
    %c0_39 = arith.constant 0 : index
    %c0_40 = arith.constant 0 : index
    %19 = vector.load %arg5[%c0_37, %c2_38, %c0_39, %c0_40] : memref<2x18x18x33xf32, #tpu.memory_space<vmem>>, vector<2x16x16x33xf32>
    %20 = vector.shape_cast %19 : vector<2x16x16x33xf32> to vector<512x33xf32>
    %c0_41 = arith.constant 0 : index
    %c2_42 = arith.constant 2 : index
    %c1_43 = arith.constant 1 : index
    %c0_44 = arith.constant 0 : index
    %21 = vector.load %arg5[%c0_41, %c2_42, %c1_43, %c0_44] : memref<2x18x18x33xf32, #tpu.memory_space<vmem>>, vector<2x16x16x33xf32>
    %22 = vector.shape_cast %21 : vector<2x16x16x33xf32> to vector<512x33xf32>
    %c0_45 = arith.constant 0 : index
    %c2_46 = arith.constant 2 : index
    %c2_47 = arith.constant 2 : index
    %c0_48 = arith.constant 0 : index
    %23 = vector.load %arg5[%c0_45, %c2_46, %c2_47, %c0_48] : memref<2x18x18x33xf32, #tpu.memory_space<vmem>>, vector<2x16x16x33xf32>
    %24 = vector.shape_cast %23 : vector<2x16x16x33xf32> to vector<512x33xf32>
    %25 = tpu.concatenate %8, %10, %12, %14, %16, %18, %20, %22, %24 in 1 : vector<512x33xf32>, vector<512x33xf32>, vector<512x33xf32>, vector<512x33xf32>, vector<512x33xf32>, vector<512x33xf32>, vector<512x33xf32>, vector<512x33xf32>, vector<512x33xf32> -> vector<512x297xf32>
    %26 = arith.truncf %25 : vector<512x297xf32> to vector<512x297xbf16>
    %c0_49 = arith.constant 0 : index
    %c0_50 = arith.constant 0 : index
    %27 = vector.load %arg3[%c0_49, %c0_50] : memref<297x32xbf16, #tpu.memory_space<vmem>>, vector<297x32xbf16>
    %cst_51 = arith.constant dense<0.000000e+00> : vector<512x32xf32>
    %28 = tpu.matmul %26, %27, %cst_51 {dimension_numbers = #tpu.dot_dimension_numbers<[1], [0], [0], [1], [0, 0, 1, 1], [], []>} : vector<512x297xbf16>, vector<297x32xbf16>, vector<512x32xf32> -> vector<512x32xf32>
    %cst_52 = arith.constant dense<0.000000e+00> : vector<32xf32>
    %29 = vector.multi_reduction <add>, %28, %cst_52 [0] : vector<512x32xf32> to vector<32xf32>
    %30 = vector.shape_cast %29 : vector<32xf32> to vector<1x32xf32>
    %31 = arith.mulf %28, %28 : vector<512x32xf32>
    %cst_53 = arith.constant dense<0.000000e+00> : vector<32xf32>
    %32 = vector.multi_reduction <add>, %31, %cst_53 [0] : vector<512x32xf32> to vector<32xf32>
    %33 = vector.shape_cast %32 : vector<32xf32> to vector<1x32xf32>
    %cst_54 = arith.constant 5.120000e+02 : f32
    %34 = vector.broadcast %cst_54 : f32 to vector<1x32xf32>
    %35 = arith.divf %30, %34 : vector<1x32xf32>
    %cst_55 = arith.constant 5.120000e+02 : f32
    %36 = vector.broadcast %cst_55 : f32 to vector<1x32xf32>
    %37 = arith.divf %33, %36 : vector<1x32xf32>
    %38 = arith.mulf %35, %35 : vector<1x32xf32>
    %39 = arith.subf %37, %38 : vector<1x32xf32>
    %cst_56 = arith.constant 0.000000e+00 : f32
    %40 = vector.broadcast %cst_56 : f32 to vector<1x32xf32>
    %41 = arith.maximumf %39, %40 : vector<1x32xf32>
    %cst_57 = arith.constant 9.99999974E-6 : f32
    %42 = vector.broadcast %cst_57 : f32 to vector<1x32xf32>
    %43 = arith.addf %41, %42 : vector<1x32xf32>
    %44 = math.rsqrt %43 : vector<1x32xf32>
    %cst_58 = arith.constant 0.000000e+00 : f32
    %45 = vector.broadcast %cst_58 : f32 to vector<1x32xf32>
    %46 = arith.subf %45, %35 : vector<1x32xf32>
    %47 = arith.mulf %46, %44 : vector<1x32xf32>
    %48 = vector.broadcast %44 : vector<1x32xf32> to vector<512x32xf32>
    %49 = arith.mulf %28, %48 : vector<512x32xf32>
    %50 = vector.broadcast %47 : vector<1x32xf32> to vector<512x32xf32>
    %51 = arith.addf %49, %50 : vector<512x32xf32>
    %cst_59 = arith.constant 0.000000e+00 : f32
    %52 = vector.broadcast %cst_59 : f32 to vector<512x32xf32>
    %53 = arith.maximumf %51, %52 : vector<512x32xf32>
    %54 = arith.truncf %53 : vector<512x32xf32> to vector<512x32xbf16>
    %c0_60 = arith.constant 0 : index
    %c0_61 = arith.constant 0 : index
    %55 = vector.load %arg4[%c0_60, %c0_61] : memref<512x32xbf16, #tpu.memory_space<vmem>>, vector<512x32xbf16>
    tpu.vector_store %arg4[%c0_60, %c0_61], %54 {strides = array<i32>} : memref<512x32xbf16, #tpu.memory_space<vmem>>, vector<512x32xbf16>,
    return
  }
  func.func @transform_0(%arg0: i32) -> (i32, i32, i32, i32) {
    %c0_i32 = arith.constant 0 : i32
    %c0_i32_0 = arith.constant 0 : i32
    %c0_i32_1 = arith.constant 0 : i32
    %c0_i32_2 = arith.constant 0 : i32
    %c0_i32_3 = arith.constant 0 : i32
    return %c0_i32, %c0_i32_0, %c0_i32_1, %c0_i32_2 : i32, i32, i32, i32
  }
  func.func @transform_1(%arg0: i32) -> (i32, i32, i32, i32) {
    %c0_i32 = arith.constant 0 : i32
    %c0_i32_0 = arith.constant 0 : i32
    %c0_i32_1 = arith.constant 0 : i32
    %c0_i32_2 = arith.constant 0 : i32
    %c0_i32_3 = arith.constant 0 : i32
    return %c0_i32, %c0_i32_0, %c0_i32_1, %c0_i32_2 : i32, i32, i32, i32
  }
  func.func @transform_2(%arg0: i32) -> (i32, i32) {
    %c0_i32 = arith.constant 0 : i32
    %c0_i32_0 = arith.constant 0 : i32
    %c0_i32_1 = arith.constant 0 : i32
    return %c0_i32, %c0_i32_0 : i32, i32
  }
  func.func @transform_3(%arg0: i32) -> (i32, i32) {
    %c0_i32 = arith.constant 0 : i32
    %c0_i32_0 = arith.constant 0 : i32
    %c0_i32_1 = arith.constant 0 : i32
    return %c0_i32, %c0_i32_0 : i32, i32
  }
}

module attributes {stable_mosaic.version = 11 : i64} {
  func.func @_fused_conv_kernel(%arg0: i32, %arg1: memref<2x16x16x32xbf16, #tpu.memory_space<vmem>>, %arg2: memref<2x16x16x32xbf16, #tpu.memory_space<vmem>>, %arg3: memref<288x32xbf16, #tpu.memory_space<vmem>>, %arg4: memref<512x32xbf16, #tpu.memory_space<vmem>>, %arg5: memref<2x18x18x32xf32, #tpu.memory_space<vmem>>) attributes {dimension_semantics = [#tpu.dimension_semantics<arbitrary>], iteration_bounds = array<i64: 1>, scalar_prefetch = 0 : i64, scratch_operands = 1 : i64, tpu.core_type = #tpu.core_type<tc>, window_params = [{pipeline_mode = #tpu.pipeline_mode<synchronous>, transform_indices = @transform_0, window_bounds = array<i64: 2, 16, 16, 32>}, {pipeline_mode = #tpu.pipeline_mode<synchronous>, transform_indices = @transform_1, window_bounds = array<i64: 2, 16, 16, 32>}, {pipeline_mode = #tpu.pipeline_mode<synchronous>, transform_indices = @transform_2, window_bounds = array<i64: 288, 32>}, {pipeline_mode = #tpu.pipeline_mode<synchronous>, transform_indices = @transform_3, window_bounds = array<i64: 512, 32>}]} {
    %c0 = arith.constant 0 : index
    %c0_0 = arith.constant 0 : index
    %c0_1 = arith.constant 0 : index
    %c0_2 = arith.constant 0 : index
    %0 = vector.load %arg1[%c0, %c0_0, %c0_1, %c0_2] : memref<2x16x16x32xbf16, #tpu.memory_space<vmem>>, vector<2x16x16x32xbf16>
    %c0_3 = arith.constant 0 : index
    %c0_4 = arith.constant 0 : index
    %c0_5 = arith.constant 0 : index
    %c0_6 = arith.constant 0 : index
    %1 = vector.load %arg2[%c0_3, %c0_4, %c0_5, %c0_6] : memref<2x16x16x32xbf16, #tpu.memory_space<vmem>>, vector<2x16x16x32xbf16>
    %2 = arith.addf %0, %1 : vector<2x16x16x32xbf16>
    %cst = arith.constant 0.000000e+00 : f32
    %3 = vector.broadcast %cst : f32 to vector<2x18x18x32xf32>
    %c0_7 = arith.constant 0 : index
    %c0_8 = arith.constant 0 : index
    %c0_9 = arith.constant 0 : index
    %c0_10 = arith.constant 0 : index
    %4 = vector.load %arg5[%c0_7, %c0_8, %c0_9, %c0_10] : memref<2x18x18x32xf32, #tpu.memory_space<vmem>>, vector<2x18x18x32xf32>
    tpu.vector_store %arg5[%c0_7, %c0_8, %c0_9, %c0_10], %3 {strides = array<i32>} : memref<2x18x18x32xf32, #tpu.memory_space<vmem>>, vector<2x18x18x32xf32>,
    %5 = arith.extf %2 : vector<2x16x16x32xbf16> to vector<2x16x16x32xf32>
    %c0_11 = arith.constant 0 : index
    %c1 = arith.constant 1 : index
    %c1_12 = arith.constant 1 : index
    %c0_13 = arith.constant 0 : index
    %6 = vector.load %arg5[%c0_11, %c1, %c1_12, %c0_13] : memref<2x18x18x32xf32, #tpu.memory_space<vmem>>, vector<2x16x16x32xf32>
    tpu.vector_store %arg5[%c0_11, %c1, %c1_12, %c0_13], %5 {strides = array<i32>} : memref<2x18x18x32xf32, #tpu.memory_space<vmem>>, vector<2x16x16x32xf32>,
    %c0_14 = arith.constant 0 : index
    %c0_15 = arith.constant 0 : index
    %c0_16 = arith.constant 0 : index
    %c0_17 = arith.constant 0 : index
    %7 = vector.load %arg5[%c0_14, %c0_15, %c0_16, %c0_17] : memref<2x18x18x32xf32, #tpu.memory_space<vmem>>, vector<2x16x16x32xf32>
    %8 = vector.shape_cast %7 : vector<2x16x16x32xf32> to vector<512x32xf32>
    %c0_18 = arith.constant 0 : index
    %c0_19 = arith.constant 0 : index
    %c1_20 = arith.constant 1 : index
    %c0_21 = arith.constant 0 : index
    %9 = vector.load %arg5[%c0_18, %c0_19, %c1_20, %c0_21] : memref<2x18x18x32xf32, #tpu.memory_space<vmem>>, vector<2x16x16x32xf32>
    %10 = vector.shape_cast %9 : vector<2x16x16x32xf32> to vector<512x32xf32>
    %c0_22 = arith.constant 0 : index
    %c0_23 = arith.constant 0 : index
    %c2 = arith.constant 2 : index
    %c0_24 = arith.constant 0 : index
    %11 = vector.load %arg5[%c0_22, %c0_23, %c2, %c0_24] : memref<2x18x18x32xf32, #tpu.memory_space<vmem>>, vector<2x16x16x32xf32>
    %12 = vector.shape_cast %11 : vector<2x16x16x32xf32> to vector<512x32xf32>
    %c0_25 = arith.constant 0 : index
    %c1_26 = arith.constant 1 : index
    %c0_27 = arith.constant 0 : index
    %c0_28 = arith.constant 0 : index
    %13 = vector.load %arg5[%c0_25, %c1_26, %c0_27, %c0_28] : memref<2x18x18x32xf32, #tpu.memory_space<vmem>>, vector<2x16x16x32xf32>
    %14 = vector.shape_cast %13 : vector<2x16x16x32xf32> to vector<512x32xf32>
    %c0_29 = arith.constant 0 : index
    %c1_30 = arith.constant 1 : index
    %c1_31 = arith.constant 1 : index
    %c0_32 = arith.constant 0 : index
    %15 = vector.load %arg5[%c0_29, %c1_30, %c1_31, %c0_32] : memref<2x18x18x32xf32, #tpu.memory_space<vmem>>, vector<2x16x16x32xf32>
    %16 = vector.shape_cast %15 : vector<2x16x16x32xf32> to vector<512x32xf32>
    %c0_33 = arith.constant 0 : index
    %c1_34 = arith.constant 1 : index
    %c2_35 = arith.constant 2 : index
    %c0_36 = arith.constant 0 : index
    %17 = vector.load %arg5[%c0_33, %c1_34, %c2_35, %c0_36] : memref<2x18x18x32xf32, #tpu.memory_space<vmem>>, vector<2x16x16x32xf32>
    %18 = vector.shape_cast %17 : vector<2x16x16x32xf32> to vector<512x32xf32>
    %c0_37 = arith.constant 0 : index
    %c2_38 = arith.constant 2 : index
    %c0_39 = arith.constant 0 : index
    %c0_40 = arith.constant 0 : index
    %19 = vector.load %arg5[%c0_37, %c2_38, %c0_39, %c0_40] : memref<2x18x18x32xf32, #tpu.memory_space<vmem>>, vector<2x16x16x32xf32>
    %20 = vector.shape_cast %19 : vector<2x16x16x32xf32> to vector<512x32xf32>
    %c0_41 = arith.constant 0 : index
    %c2_42 = arith.constant 2 : index
    %c1_43 = arith.constant 1 : index
    %c0_44 = arith.constant 0 : index
    %21 = vector.load %arg5[%c0_41, %c2_42, %c1_43, %c0_44] : memref<2x18x18x32xf32, #tpu.memory_space<vmem>>, vector<2x16x16x32xf32>
    %22 = vector.shape_cast %21 : vector<2x16x16x32xf32> to vector<512x32xf32>
    %c0_45 = arith.constant 0 : index
    %c2_46 = arith.constant 2 : index
    %c2_47 = arith.constant 2 : index
    %c0_48 = arith.constant 0 : index
    %23 = vector.load %arg5[%c0_45, %c2_46, %c2_47, %c0_48] : memref<2x18x18x32xf32, #tpu.memory_space<vmem>>, vector<2x16x16x32xf32>
    %24 = vector.shape_cast %23 : vector<2x16x16x32xf32> to vector<512x32xf32>
    %25 = tpu.concatenate %8, %10, %12, %14, %16, %18, %20, %22, %24 in 1 : vector<512x32xf32>, vector<512x32xf32>, vector<512x32xf32>, vector<512x32xf32>, vector<512x32xf32>, vector<512x32xf32>, vector<512x32xf32>, vector<512x32xf32>, vector<512x32xf32> -> vector<512x288xf32>
    %26 = arith.truncf %25 : vector<512x288xf32> to vector<512x288xbf16>
    %c0_49 = arith.constant 0 : index
    %c0_50 = arith.constant 0 : index
    %27 = vector.load %arg3[%c0_49, %c0_50] : memref<288x32xbf16, #tpu.memory_space<vmem>>, vector<288x32xbf16>
    %cst_51 = arith.constant dense<0.000000e+00> : vector<512x32xf32>
    %28 = tpu.matmul %26, %27, %cst_51 {dimension_numbers = #tpu.dot_dimension_numbers<[1], [0], [0], [1], [0, 0, 1, 1], [], []>} : vector<512x288xbf16>, vector<288x32xbf16>, vector<512x32xf32> -> vector<512x32xf32>
    %cst_52 = arith.constant dense<0.000000e+00> : vector<32xf32>
    %29 = vector.multi_reduction <add>, %28, %cst_52 [0] : vector<512x32xf32> to vector<32xf32>
    %30 = vector.shape_cast %29 : vector<32xf32> to vector<1x32xf32>
    %31 = arith.mulf %28, %28 : vector<512x32xf32>
    %cst_53 = arith.constant dense<0.000000e+00> : vector<32xf32>
    %32 = vector.multi_reduction <add>, %31, %cst_53 [0] : vector<512x32xf32> to vector<32xf32>
    %33 = vector.shape_cast %32 : vector<32xf32> to vector<1x32xf32>
    %cst_54 = arith.constant 5.120000e+02 : f32
    %34 = vector.broadcast %cst_54 : f32 to vector<1x32xf32>
    %35 = arith.divf %30, %34 : vector<1x32xf32>
    %cst_55 = arith.constant 5.120000e+02 : f32
    %36 = vector.broadcast %cst_55 : f32 to vector<1x32xf32>
    %37 = arith.divf %33, %36 : vector<1x32xf32>
    %38 = arith.mulf %35, %35 : vector<1x32xf32>
    %39 = arith.subf %37, %38 : vector<1x32xf32>
    %cst_56 = arith.constant 0.000000e+00 : f32
    %40 = vector.broadcast %cst_56 : f32 to vector<1x32xf32>
    %41 = arith.maximumf %39, %40 : vector<1x32xf32>
    %cst_57 = arith.constant 9.99999974E-6 : f32
    %42 = vector.broadcast %cst_57 : f32 to vector<1x32xf32>
    %43 = arith.addf %41, %42 : vector<1x32xf32>
    %44 = math.rsqrt %43 : vector<1x32xf32>
    %cst_58 = arith.constant 0.000000e+00 : f32
    %45 = vector.broadcast %cst_58 : f32 to vector<1x32xf32>
    %46 = arith.subf %45, %35 : vector<1x32xf32>
    %47 = arith.mulf %46, %44 : vector<1x32xf32>
    %48 = vector.broadcast %44 : vector<1x32xf32> to vector<512x32xf32>
    %49 = arith.mulf %28, %48 : vector<512x32xf32>
    %50 = vector.broadcast %47 : vector<1x32xf32> to vector<512x32xf32>
    %51 = arith.addf %49, %50 : vector<512x32xf32>
    %cst_59 = arith.constant 0.000000e+00 : f32
    %52 = vector.broadcast %cst_59 : f32 to vector<512x32xf32>
    %53 = arith.maximumf %51, %52 : vector<512x32xf32>
    %54 = arith.truncf %53 : vector<512x32xf32> to vector<512x32xbf16>
    %c0_60 = arith.constant 0 : index
    %c0_61 = arith.constant 0 : index
    %55 = vector.load %arg4[%c0_60, %c0_61] : memref<512x32xbf16, #tpu.memory_space<vmem>>, vector<512x32xbf16>
    tpu.vector_store %arg4[%c0_60, %c0_61], %54 {strides = array<i32>} : memref<512x32xbf16, #tpu.memory_space<vmem>>, vector<512x32xbf16>,
    return
  }
  func.func @transform_0(%arg0: i32) -> (i32, i32, i32, i32) {
    %c0_i32 = arith.constant 0 : i32
    %c0_i32_0 = arith.constant 0 : i32
    %c0_i32_1 = arith.constant 0 : i32
    %c0_i32_2 = arith.constant 0 : i32
    %c0_i32_3 = arith.constant 0 : i32
    return %c0_i32, %c0_i32_0, %c0_i32_1, %c0_i32_2 : i32, i32, i32, i32
  }
  func.func @transform_1(%arg0: i32) -> (i32, i32, i32, i32) {
    %c0_i32 = arith.constant 0 : i32
    %c0_i32_0 = arith.constant 0 : i32
    %c0_i32_1 = arith.constant 0 : i32
    %c0_i32_2 = arith.constant 0 : i32
    %c0_i32_3 = arith.constant 0 : i32
    return %c0_i32, %c0_i32_0, %c0_i32_1, %c0_i32_2 : i32, i32, i32, i32
  }
  func.func @transform_2(%arg0: i32) -> (i32, i32) {
    %c0_i32 = arith.constant 0 : i32
    %c0_i32_0 = arith.constant 0 : i32
    %c0_i32_1 = arith.constant 0 : i32
    return %c0_i32, %c0_i32_0 : i32, i32
  }
  func.func @transform_3(%arg0: i32) -> (i32, i32) {
    %c0_i32 = arith.constant 0 : i32
    %c0_i32_0 = arith.constant 0 : i32
    %c0_i32_1 = arith.constant 0 : i32
    return %c0_i32, %c0_i32_0 : i32, i32
  }
}

module attributes {stable_mosaic.version = 11 : i64} {
  func.func @_fused_conv_kernel(%arg0: i32, %arg1: memref<2x16x16x32xbf16, #tpu.memory_space<vmem>>, %arg2: memref<288x32xbf16, #tpu.memory_space<vmem>>, %arg3: memref<512x32xbf16, #tpu.memory_space<vmem>>, %arg4: memref<2x18x18x32xf32, #tpu.memory_space<vmem>>) attributes {dimension_semantics = [#tpu.dimension_semantics<arbitrary>], iteration_bounds = array<i64: 1>, scalar_prefetch = 0 : i64, scratch_operands = 1 : i64, tpu.core_type = #tpu.core_type<tc>, window_params = [{pipeline_mode = #tpu.pipeline_mode<synchronous>, transform_indices = @transform_0, window_bounds = array<i64: 2, 16, 16, 32>}, {pipeline_mode = #tpu.pipeline_mode<synchronous>, transform_indices = @transform_1, window_bounds = array<i64: 288, 32>}, {pipeline_mode = #tpu.pipeline_mode<synchronous>, transform_indices = @transform_2, window_bounds = array<i64: 512, 32>}]} {
    %c0 = arith.constant 0 : index
    %c0_0 = arith.constant 0 : index
    %c0_1 = arith.constant 0 : index
    %c0_2 = arith.constant 0 : index
    %0 = vector.load %arg1[%c0, %c0_0, %c0_1, %c0_2] : memref<2x16x16x32xbf16, #tpu.memory_space<vmem>>, vector<2x16x16x32xbf16>
    %cst = arith.constant 0.000000e+00 : f32
    %1 = vector.broadcast %cst : f32 to vector<2x18x18x32xf32>
    %c0_3 = arith.constant 0 : index
    %c0_4 = arith.constant 0 : index
    %c0_5 = arith.constant 0 : index
    %c0_6 = arith.constant 0 : index
    %2 = vector.load %arg4[%c0_3, %c0_4, %c0_5, %c0_6] : memref<2x18x18x32xf32, #tpu.memory_space<vmem>>, vector<2x18x18x32xf32>
    tpu.vector_store %arg4[%c0_3, %c0_4, %c0_5, %c0_6], %1 {strides = array<i32>} : memref<2x18x18x32xf32, #tpu.memory_space<vmem>>, vector<2x18x18x32xf32>,
    %3 = arith.extf %0 : vector<2x16x16x32xbf16> to vector<2x16x16x32xf32>
    %c0_7 = arith.constant 0 : index
    %c1 = arith.constant 1 : index
    %c1_8 = arith.constant 1 : index
    %c0_9 = arith.constant 0 : index
    %4 = vector.load %arg4[%c0_7, %c1, %c1_8, %c0_9] : memref<2x18x18x32xf32, #tpu.memory_space<vmem>>, vector<2x16x16x32xf32>
    tpu.vector_store %arg4[%c0_7, %c1, %c1_8, %c0_9], %3 {strides = array<i32>} : memref<2x18x18x32xf32, #tpu.memory_space<vmem>>, vector<2x16x16x32xf32>,
    %c0_10 = arith.constant 0 : index
    %c0_11 = arith.constant 0 : index
    %c0_12 = arith.constant 0 : index
    %c0_13 = arith.constant 0 : index
    %5 = vector.load %arg4[%c0_10, %c0_11, %c0_12, %c0_13] : memref<2x18x18x32xf32, #tpu.memory_space<vmem>>, vector<2x16x16x32xf32>
    %6 = vector.shape_cast %5 : vector<2x16x16x32xf32> to vector<512x32xf32>
    %c0_14 = arith.constant 0 : index
    %c0_15 = arith.constant 0 : index
    %c1_16 = arith.constant 1 : index
    %c0_17 = arith.constant 0 : index
    %7 = vector.load %arg4[%c0_14, %c0_15, %c1_16, %c0_17] : memref<2x18x18x32xf32, #tpu.memory_space<vmem>>, vector<2x16x16x32xf32>
    %8 = vector.shape_cast %7 : vector<2x16x16x32xf32> to vector<512x32xf32>
    %c0_18 = arith.constant 0 : index
    %c0_19 = arith.constant 0 : index
    %c2 = arith.constant 2 : index
    %c0_20 = arith.constant 0 : index
    %9 = vector.load %arg4[%c0_18, %c0_19, %c2, %c0_20] : memref<2x18x18x32xf32, #tpu.memory_space<vmem>>, vector<2x16x16x32xf32>
    %10 = vector.shape_cast %9 : vector<2x16x16x32xf32> to vector<512x32xf32>
    %c0_21 = arith.constant 0 : index
    %c1_22 = arith.constant 1 : index
    %c0_23 = arith.constant 0 : index
    %c0_24 = arith.constant 0 : index
    %11 = vector.load %arg4[%c0_21, %c1_22, %c0_23, %c0_24] : memref<2x18x18x32xf32, #tpu.memory_space<vmem>>, vector<2x16x16x32xf32>
    %12 = vector.shape_cast %11 : vector<2x16x16x32xf32> to vector<512x32xf32>
    %c0_25 = arith.constant 0 : index
    %c1_26 = arith.constant 1 : index
    %c1_27 = arith.constant 1 : index
    %c0_28 = arith.constant 0 : index
    %13 = vector.load %arg4[%c0_25, %c1_26, %c1_27, %c0_28] : memref<2x18x18x32xf32, #tpu.memory_space<vmem>>, vector<2x16x16x32xf32>
    %14 = vector.shape_cast %13 : vector<2x16x16x32xf32> to vector<512x32xf32>
    %c0_29 = arith.constant 0 : index
    %c1_30 = arith.constant 1 : index
    %c2_31 = arith.constant 2 : index
    %c0_32 = arith.constant 0 : index
    %15 = vector.load %arg4[%c0_29, %c1_30, %c2_31, %c0_32] : memref<2x18x18x32xf32, #tpu.memory_space<vmem>>, vector<2x16x16x32xf32>
    %16 = vector.shape_cast %15 : vector<2x16x16x32xf32> to vector<512x32xf32>
    %c0_33 = arith.constant 0 : index
    %c2_34 = arith.constant 2 : index
    %c0_35 = arith.constant 0 : index
    %c0_36 = arith.constant 0 : index
    %17 = vector.load %arg4[%c0_33, %c2_34, %c0_35, %c0_36] : memref<2x18x18x32xf32, #tpu.memory_space<vmem>>, vector<2x16x16x32xf32>
    %18 = vector.shape_cast %17 : vector<2x16x16x32xf32> to vector<512x32xf32>
    %c0_37 = arith.constant 0 : index
    %c2_38 = arith.constant 2 : index
    %c1_39 = arith.constant 1 : index
    %c0_40 = arith.constant 0 : index
    %19 = vector.load %arg4[%c0_37, %c2_38, %c1_39, %c0_40] : memref<2x18x18x32xf32, #tpu.memory_space<vmem>>, vector<2x16x16x32xf32>
    %20 = vector.shape_cast %19 : vector<2x16x16x32xf32> to vector<512x32xf32>
    %c0_41 = arith.constant 0 : index
    %c2_42 = arith.constant 2 : index
    %c2_43 = arith.constant 2 : index
    %c0_44 = arith.constant 0 : index
    %21 = vector.load %arg4[%c0_41, %c2_42, %c2_43, %c0_44] : memref<2x18x18x32xf32, #tpu.memory_space<vmem>>, vector<2x16x16x32xf32>
    %22 = vector.shape_cast %21 : vector<2x16x16x32xf32> to vector<512x32xf32>
    %23 = tpu.concatenate %6, %8, %10, %12, %14, %16, %18, %20, %22 in 1 : vector<512x32xf32>, vector<512x32xf32>, vector<512x32xf32>, vector<512x32xf32>, vector<512x32xf32>, vector<512x32xf32>, vector<512x32xf32>, vector<512x32xf32>, vector<512x32xf32> -> vector<512x288xf32>
    %24 = arith.truncf %23 : vector<512x288xf32> to vector<512x288xbf16>
    %c0_45 = arith.constant 0 : index
    %c0_46 = arith.constant 0 : index
    %25 = vector.load %arg2[%c0_45, %c0_46] : memref<288x32xbf16, #tpu.memory_space<vmem>>, vector<288x32xbf16>
    %cst_47 = arith.constant dense<0.000000e+00> : vector<512x32xf32>
    %26 = tpu.matmul %24, %25, %cst_47 {dimension_numbers = #tpu.dot_dimension_numbers<[1], [0], [0], [1], [0, 0, 1, 1], [], []>} : vector<512x288xbf16>, vector<288x32xbf16>, vector<512x32xf32> -> vector<512x32xf32>
    %cst_48 = arith.constant dense<0.000000e+00> : vector<32xf32>
    %27 = vector.multi_reduction <add>, %26, %cst_48 [0] : vector<512x32xf32> to vector<32xf32>
    %28 = vector.shape_cast %27 : vector<32xf32> to vector<1x32xf32>
    %29 = arith.mulf %26, %26 : vector<512x32xf32>
    %cst_49 = arith.constant dense<0.000000e+00> : vector<32xf32>
    %30 = vector.multi_reduction <add>, %29, %cst_49 [0] : vector<512x32xf32> to vector<32xf32>
    %31 = vector.shape_cast %30 : vector<32xf32> to vector<1x32xf32>
    %cst_50 = arith.constant 5.120000e+02 : f32
    %32 = vector.broadcast %cst_50 : f32 to vector<1x32xf32>
    %33 = arith.divf %28, %32 : vector<1x32xf32>
    %cst_51 = arith.constant 5.120000e+02 : f32
    %34 = vector.broadcast %cst_51 : f32 to vector<1x32xf32>
    %35 = arith.divf %31, %34 : vector<1x32xf32>
    %36 = arith.mulf %33, %33 : vector<1x32xf32>
    %37 = arith.subf %35, %36 : vector<1x32xf32>
    %cst_52 = arith.constant 0.000000e+00 : f32
    %38 = vector.broadcast %cst_52 : f32 to vector<1x32xf32>
    %39 = arith.maximumf %37, %38 : vector<1x32xf32>
    %cst_53 = arith.constant 9.99999974E-6 : f32
    %40 = vector.broadcast %cst_53 : f32 to vector<1x32xf32>
    %41 = arith.addf %39, %40 : vector<1x32xf32>
    %42 = math.rsqrt %41 : vector<1x32xf32>
    %cst_54 = arith.constant 0.000000e+00 : f32
    %43 = vector.broadcast %cst_54 : f32 to vector<1x32xf32>
    %44 = arith.subf %43, %33 : vector<1x32xf32>
    %45 = arith.mulf %44, %42 : vector<1x32xf32>
    %46 = vector.broadcast %42 : vector<1x32xf32> to vector<512x32xf32>
    %47 = arith.mulf %26, %46 : vector<512x32xf32>
    %48 = vector.broadcast %45 : vector<1x32xf32> to vector<512x32xf32>
    %49 = arith.addf %47, %48 : vector<512x32xf32>
    %cst_55 = arith.constant 0.000000e+00 : f32
    %50 = vector.broadcast %cst_55 : f32 to vector<512x32xf32>
    %51 = arith.maximumf %49, %50 : vector<512x32xf32>
    %52 = arith.truncf %51 : vector<512x32xf32> to vector<512x32xbf16>
    %c0_56 = arith.constant 0 : index
    %c0_57 = arith.constant 0 : index
    %53 = vector.load %arg3[%c0_56, %c0_57] : memref<512x32xbf16, #tpu.memory_space<vmem>>, vector<512x32xbf16>
    tpu.vector_store %arg3[%c0_56, %c0_57], %52 {strides = array<i32>} : memref<512x32xbf16, #tpu.memory_space<vmem>>, vector<512x32xbf16>,
    return
  }
  func.func @transform_0(%arg0: i32) -> (i32, i32, i32, i32) {
    %c0_i32 = arith.constant 0 : i32
    %c0_i32_0 = arith.constant 0 : i32
    %c0_i32_1 = arith.constant 0 : i32
    %c0_i32_2 = arith.constant 0 : i32
    %c0_i32_3 = arith.constant 0 : i32
    return %c0_i32, %c0_i32_0, %c0_i32_1, %c0_i32_2 : i32, i32, i32, i32
  }
  func.func @transform_1(%arg0: i32) -> (i32, i32) {
    %c0_i32 = arith.constant 0 : i32
    %c0_i32_0 = arith.constant 0 : i32
    %c0_i32_1 = arith.constant 0 : i32
    return %c0_i32, %c0_i32_0 : i32, i32
  }
  func.func @transform_2(%arg0: i32) -> (i32, i32) {
    %c0_i32 = arith.constant 0 : i32
    %c0_i32_0 = arith.constant 0 : i32
    %c0_i32_1 = arith.constant 0 : i32
    return %c0_i32, %c0_i32_0 : i32, i32
  }
}

module attributes {stable_mosaic.version = 11 : i64} {
  func.func @_fused_conv_kernel(%arg0: i32, %arg1: memref<512x32xbf16, #tpu.memory_space<vmem>>, %arg2: memref<512x32xbf16, #tpu.memory_space<vmem>>, %arg3: memref<64x64xbf16, #tpu.memory_space<vmem>>, %arg4: memref<1x64xf32, #tpu.memory_space<vmem>>, %arg5: memref<512x64xbf16, #tpu.memory_space<vmem>>) attributes {dimension_semantics = [#tpu.dimension_semantics<arbitrary>], iteration_bounds = array<i64: 1>, scalar_prefetch = 0 : i64, scratch_operands = 0 : i64, tpu.core_type = #tpu.core_type<tc>, window_params = [{pipeline_mode = #tpu.pipeline_mode<synchronous>, transform_indices = @transform_0, window_bounds = array<i64: 512, 32>}, {pipeline_mode = #tpu.pipeline_mode<synchronous>, transform_indices = @transform_1, window_bounds = array<i64: 512, 32>}, {pipeline_mode = #tpu.pipeline_mode<synchronous>, transform_indices = @transform_2, window_bounds = array<i64: 64, 64>}, {pipeline_mode = #tpu.pipeline_mode<synchronous>, transform_indices = @transform_3, window_bounds = array<i64: 1, 64>}, {pipeline_mode = #tpu.pipeline_mode<synchronous>, transform_indices = @transform_4, window_bounds = array<i64: 512, 64>}]} {
    %c0 = arith.constant 0 : index
    %c0_0 = arith.constant 0 : index
    %0 = vector.load %arg1[%c0, %c0_0] : memref<512x32xbf16, #tpu.memory_space<vmem>>, vector<512x32xbf16>
    %c0_1 = arith.constant 0 : index
    %c0_2 = arith.constant 0 : index
    %1 = vector.load %arg2[%c0_1, %c0_2] : memref<512x32xbf16, #tpu.memory_space<vmem>>, vector<512x32xbf16>
    %2 = tpu.concatenate %0, %1 in 1 : vector<512x32xbf16>, vector<512x32xbf16> -> vector<512x64xbf16>
    %c0_3 = arith.constant 0 : index
    %c0_4 = arith.constant 0 : index
    %3 = vector.load %arg3[%c0_3, %c0_4] : memref<64x64xbf16, #tpu.memory_space<vmem>>, vector<64x64xbf16>
    %cst = arith.constant dense<0.000000e+00> : vector<512x64xf32>
    %4 = tpu.matmul %2, %3, %cst {dimension_numbers = #tpu.dot_dimension_numbers<[1], [0], [0], [1], [0, 0, 1, 1], [], []>} : vector<512x64xbf16>, vector<64x64xbf16>, vector<512x64xf32> -> vector<512x64xf32>
    %c0_5 = arith.constant 0 : index
    %c0_6 = arith.constant 0 : index
    %5 = vector.load %arg4[%c0_5, %c0_6] : memref<1x64xf32, #tpu.memory_space<vmem>>, vector<1x64xf32>
    %6 = vector.broadcast %5 : vector<1x64xf32> to vector<512x64xf32>
    %7 = arith.addf %4, %6 : vector<512x64xf32>
    %cst_7 = arith.constant dense<0.000000e+00> : vector<64xf32>
    %8 = vector.multi_reduction <add>, %7, %cst_7 [0] : vector<512x64xf32> to vector<64xf32>
    %9 = vector.shape_cast %8 : vector<64xf32> to vector<1x64xf32>
    %10 = arith.mulf %7, %7 : vector<512x64xf32>
    %cst_8 = arith.constant dense<0.000000e+00> : vector<64xf32>
    %11 = vector.multi_reduction <add>, %10, %cst_8 [0] : vector<512x64xf32> to vector<64xf32>
    %12 = vector.shape_cast %11 : vector<64xf32> to vector<1x64xf32>
    %13 = vector.extract_strided_slice %9 {offsets = [0, 0], sizes = [1, 32], strides = [1, 1]} : vector<1x64xf32> to vector<1x32xf32>
    %14 = vector.extract_strided_slice %9 {offsets = [0, 32], sizes = [1, 32], strides = [1, 1]} : vector<1x64xf32> to vector<1x32xf32>
    %15 = arith.addf %13, %14 : vector<1x32xf32>
    %16 = vector.extract_strided_slice %12 {offsets = [0, 0], sizes = [1, 32], strides = [1, 1]} : vector<1x64xf32> to vector<1x32xf32>
    %17 = vector.extract_strided_slice %12 {offsets = [0, 32], sizes = [1, 32], strides = [1, 1]} : vector<1x64xf32> to vector<1x32xf32>
    %18 = arith.addf %16, %17 : vector<1x32xf32>
    %cst_9 = arith.constant 1.024000e+03 : f32
    %19 = vector.broadcast %cst_9 : f32 to vector<1x32xf32>
    %20 = arith.divf %15, %19 : vector<1x32xf32>
    %cst_10 = arith.constant 1.024000e+03 : f32
    %21 = vector.broadcast %cst_10 : f32 to vector<1x32xf32>
    %22 = arith.divf %18, %21 : vector<1x32xf32>
    %23 = arith.mulf %20, %20 : vector<1x32xf32>
    %24 = arith.subf %22, %23 : vector<1x32xf32>
    %cst_11 = arith.constant 0.000000e+00 : f32
    %25 = vector.broadcast %cst_11 : f32 to vector<1x32xf32>
    %26 = arith.maximumf %24, %25 : vector<1x32xf32>
    %cst_12 = arith.constant 9.99999974E-6 : f32
    %27 = vector.broadcast %cst_12 : f32 to vector<1x32xf32>
    %28 = arith.addf %26, %27 : vector<1x32xf32>
    %29 = math.rsqrt %28 : vector<1x32xf32>
    %cst_13 = arith.constant 0.000000e+00 : f32
    %30 = vector.broadcast %cst_13 : f32 to vector<1x32xf32>
    %31 = arith.subf %30, %20 : vector<1x32xf32>
    %32 = arith.mulf %31, %29 : vector<1x32xf32>
    %33 = tpu.concatenate %29, %29 in 1 : vector<1x32xf32>, vector<1x32xf32> -> vector<1x64xf32>
    %34 = tpu.concatenate %32, %32 in 1 : vector<1x32xf32>, vector<1x32xf32> -> vector<1x64xf32>
    %35 = vector.broadcast %33 : vector<1x64xf32> to vector<512x64xf32>
    %36 = arith.mulf %7, %35 : vector<512x64xf32>
    %37 = vector.broadcast %34 : vector<1x64xf32> to vector<512x64xf32>
    %38 = arith.addf %36, %37 : vector<512x64xf32>
    %cst_14 = arith.constant 0.000000e+00 : f32
    %39 = vector.broadcast %cst_14 : f32 to vector<512x64xf32>
    %40 = arith.maximumf %38, %39 : vector<512x64xf32>
    %41 = arith.truncf %40 : vector<512x64xf32> to vector<512x64xbf16>
    %c0_15 = arith.constant 0 : index
    %c0_16 = arith.constant 0 : index
    %42 = vector.load %arg5[%c0_15, %c0_16] : memref<512x64xbf16, #tpu.memory_space<vmem>>, vector<512x64xbf16>
    tpu.vector_store %arg5[%c0_15, %c0_16], %41 {strides = array<i32>} : memref<512x64xbf16, #tpu.memory_space<vmem>>, vector<512x64xbf16>,
    return
  }
  func.func @transform_0(%arg0: i32) -> (i32, i32) {
    %c0_i32 = arith.constant 0 : i32
    %c0_i32_0 = arith.constant 0 : i32
    %c0_i32_1 = arith.constant 0 : i32
    return %c0_i32, %c0_i32_0 : i32, i32
  }
  func.func @transform_1(%arg0: i32) -> (i32, i32) {
    %c0_i32 = arith.constant 0 : i32
    %c0_i32_0 = arith.constant 0 : i32
    %c0_i32_1 = arith.constant 0 : i32
    return %c0_i32, %c0_i32_0 : i32, i32
  }
  func.func @transform_2(%arg0: i32) -> (i32, i32) {
    %c0_i32 = arith.constant 0 : i32
    %c0_i32_0 = arith.constant 0 : i32
    %c0_i32_1 = arith.constant 0 : i32
    return %c0_i32, %c0_i32_0 : i32, i32
  }
  func.func @transform_3(%arg0: i32) -> (i32, i32) {
    %c0_i32 = arith.constant 0 : i32
    %c0_i32_0 = arith.constant 0 : i32
    %c0_i32_1 = arith.constant 0 : i32
    return %c0_i32, %c0_i32_0 : i32, i32
  }
  func.func @transform_4(%arg0: i32) -> (i32, i32) {
    %c0_i32 = arith.constant 0 : i32
    %c0_i32_0 = arith.constant 0 : i32
    %c0_i32_1 = arith.constant 0 : i32
    return %c0_i32, %c0_i32_0 : i32, i32
  }
}

module attributes {stable_mosaic.version = 11 : i64} {
  func.func @_fused_conv_kernel(%arg0: i32, %arg1: memref<2x16x16x64xbf16, #tpu.memory_space<vmem>>, %arg2: memref<576x64xbf16, #tpu.memory_space<vmem>>, %arg3: memref<1x64xf32, #tpu.memory_space<vmem>>, %arg4: memref<512x64xbf16, #tpu.memory_space<vmem>>, %arg5: memref<2x18x18x64xf32, #tpu.memory_space<vmem>>) attributes {dimension_semantics = [#tpu.dimension_semantics<arbitrary>], iteration_bounds = array<i64: 1>, scalar_prefetch = 0 : i64, scratch_operands = 1 : i64, tpu.core_type = #tpu.core_type<tc>, window_params = [{pipeline_mode = #tpu.pipeline_mode<synchronous>, transform_indices = @transform_0, window_bounds = array<i64: 2, 16, 16, 64>}, {pipeline_mode = #tpu.pipeline_mode<synchronous>, transform_indices = @transform_1, window_bounds = array<i64: 576, 64>}, {pipeline_mode = #tpu.pipeline_mode<synchronous>, transform_indices = @transform_2, window_bounds = array<i64: 1, 64>}, {pipeline_mode = #tpu.pipeline_mode<synchronous>, transform_indices = @transform_3, window_bounds = array<i64: 512, 64>}]} {
    %c0 = arith.constant 0 : index
    %c0_0 = arith.constant 0 : index
    %c0_1 = arith.constant 0 : index
    %c0_2 = arith.constant 0 : index
    %0 = vector.load %arg1[%c0, %c0_0, %c0_1, %c0_2] : memref<2x16x16x64xbf16, #tpu.memory_space<vmem>>, vector<2x16x16x64xbf16>
    %cst = arith.constant 0.000000e+00 : f32
    %1 = vector.broadcast %cst : f32 to vector<2x18x18x64xf32>
    %c0_3 = arith.constant 0 : index
    %c0_4 = arith.constant 0 : index
    %c0_5 = arith.constant 0 : index
    %c0_6 = arith.constant 0 : index
    %2 = vector.load %arg5[%c0_3, %c0_4, %c0_5, %c0_6] : memref<2x18x18x64xf32, #tpu.memory_space<vmem>>, vector<2x18x18x64xf32>
    tpu.vector_store %arg5[%c0_3, %c0_4, %c0_5, %c0_6], %1 {strides = array<i32>} : memref<2x18x18x64xf32, #tpu.memory_space<vmem>>, vector<2x18x18x64xf32>,
    %3 = arith.extf %0 : vector<2x16x16x64xbf16> to vector<2x16x16x64xf32>
    %c0_7 = arith.constant 0 : index
    %c1 = arith.constant 1 : index
    %c1_8 = arith.constant 1 : index
    %c0_9 = arith.constant 0 : index
    %4 = vector.load %arg5[%c0_7, %c1, %c1_8, %c0_9] : memref<2x18x18x64xf32, #tpu.memory_space<vmem>>, vector<2x16x16x64xf32>
    tpu.vector_store %arg5[%c0_7, %c1, %c1_8, %c0_9], %3 {strides = array<i32>} : memref<2x18x18x64xf32, #tpu.memory_space<vmem>>, vector<2x16x16x64xf32>,
    %c0_10 = arith.constant 0 : index
    %c0_11 = arith.constant 0 : index
    %c0_12 = arith.constant 0 : index
    %c0_13 = arith.constant 0 : index
    %5 = vector.load %arg5[%c0_10, %c0_11, %c0_12, %c0_13] : memref<2x18x18x64xf32, #tpu.memory_space<vmem>>, vector<2x16x16x64xf32>
    %6 = vector.shape_cast %5 : vector<2x16x16x64xf32> to vector<512x64xf32>
    %c0_14 = arith.constant 0 : index
    %c0_15 = arith.constant 0 : index
    %c1_16 = arith.constant 1 : index
    %c0_17 = arith.constant 0 : index
    %7 = vector.load %arg5[%c0_14, %c0_15, %c1_16, %c0_17] : memref<2x18x18x64xf32, #tpu.memory_space<vmem>>, vector<2x16x16x64xf32>
    %8 = vector.shape_cast %7 : vector<2x16x16x64xf32> to vector<512x64xf32>
    %c0_18 = arith.constant 0 : index
    %c0_19 = arith.constant 0 : index
    %c2 = arith.constant 2 : index
    %c0_20 = arith.constant 0 : index
    %9 = vector.load %arg5[%c0_18, %c0_19, %c2, %c0_20] : memref<2x18x18x64xf32, #tpu.memory_space<vmem>>, vector<2x16x16x64xf32>
    %10 = vector.shape_cast %9 : vector<2x16x16x64xf32> to vector<512x64xf32>
    %c0_21 = arith.constant 0 : index
    %c1_22 = arith.constant 1 : index
    %c0_23 = arith.constant 0 : index
    %c0_24 = arith.constant 0 : index
    %11 = vector.load %arg5[%c0_21, %c1_22, %c0_23, %c0_24] : memref<2x18x18x64xf32, #tpu.memory_space<vmem>>, vector<2x16x16x64xf32>
    %12 = vector.shape_cast %11 : vector<2x16x16x64xf32> to vector<512x64xf32>
    %c0_25 = arith.constant 0 : index
    %c1_26 = arith.constant 1 : index
    %c1_27 = arith.constant 1 : index
    %c0_28 = arith.constant 0 : index
    %13 = vector.load %arg5[%c0_25, %c1_26, %c1_27, %c0_28] : memref<2x18x18x64xf32, #tpu.memory_space<vmem>>, vector<2x16x16x64xf32>
    %14 = vector.shape_cast %13 : vector<2x16x16x64xf32> to vector<512x64xf32>
    %c0_29 = arith.constant 0 : index
    %c1_30 = arith.constant 1 : index
    %c2_31 = arith.constant 2 : index
    %c0_32 = arith.constant 0 : index
    %15 = vector.load %arg5[%c0_29, %c1_30, %c2_31, %c0_32] : memref<2x18x18x64xf32, #tpu.memory_space<vmem>>, vector<2x16x16x64xf32>
    %16 = vector.shape_cast %15 : vector<2x16x16x64xf32> to vector<512x64xf32>
    %c0_33 = arith.constant 0 : index
    %c2_34 = arith.constant 2 : index
    %c0_35 = arith.constant 0 : index
    %c0_36 = arith.constant 0 : index
    %17 = vector.load %arg5[%c0_33, %c2_34, %c0_35, %c0_36] : memref<2x18x18x64xf32, #tpu.memory_space<vmem>>, vector<2x16x16x64xf32>
    %18 = vector.shape_cast %17 : vector<2x16x16x64xf32> to vector<512x64xf32>
    %c0_37 = arith.constant 0 : index
    %c2_38 = arith.constant 2 : index
    %c1_39 = arith.constant 1 : index
    %c0_40 = arith.constant 0 : index
    %19 = vector.load %arg5[%c0_37, %c2_38, %c1_39, %c0_40] : memref<2x18x18x64xf32, #tpu.memory_space<vmem>>, vector<2x16x16x64xf32>
    %20 = vector.shape_cast %19 : vector<2x16x16x64xf32> to vector<512x64xf32>
    %c0_41 = arith.constant 0 : index
    %c2_42 = arith.constant 2 : index
    %c2_43 = arith.constant 2 : index
    %c0_44 = arith.constant 0 : index
    %21 = vector.load %arg5[%c0_41, %c2_42, %c2_43, %c0_44] : memref<2x18x18x64xf32, #tpu.memory_space<vmem>>, vector<2x16x16x64xf32>
    %22 = vector.shape_cast %21 : vector<2x16x16x64xf32> to vector<512x64xf32>
    %23 = tpu.concatenate %6, %8, %10, %12, %14, %16, %18, %20, %22 in 1 : vector<512x64xf32>, vector<512x64xf32>, vector<512x64xf32>, vector<512x64xf32>, vector<512x64xf32>, vector<512x64xf32>, vector<512x64xf32>, vector<512x64xf32>, vector<512x64xf32> -> vector<512x576xf32>
    %24 = arith.truncf %23 : vector<512x576xf32> to vector<512x576xbf16>
    %c0_45 = arith.constant 0 : index
    %c0_46 = arith.constant 0 : index
    %25 = vector.load %arg2[%c0_45, %c0_46] : memref<576x64xbf16, #tpu.memory_space<vmem>>, vector<576x64xbf16>
    %cst_47 = arith.constant dense<0.000000e+00> : vector<512x64xf32>
    %26 = tpu.matmul %24, %25, %cst_47 {dimension_numbers = #tpu.dot_dimension_numbers<[1], [0], [0], [1], [0, 0, 1, 1], [], []>} : vector<512x576xbf16>, vector<576x64xbf16>, vector<512x64xf32> -> vector<512x64xf32>
    %c0_48 = arith.constant 0 : index
    %c0_49 = arith.constant 0 : index
    %27 = vector.load %arg3[%c0_48, %c0_49] : memref<1x64xf32, #tpu.memory_space<vmem>>, vector<1x64xf32>
    %28 = vector.broadcast %27 : vector<1x64xf32> to vector<512x64xf32>
    %29 = arith.addf %26, %28 : vector<512x64xf32>
    %cst_50 = arith.constant dense<0.000000e+00> : vector<64xf32>
    %30 = vector.multi_reduction <add>, %29, %cst_50 [0] : vector<512x64xf32> to vector<64xf32>
    %31 = vector.shape_cast %30 : vector<64xf32> to vector<1x64xf32>
    %32 = arith.mulf %29, %29 : vector<512x64xf32>
    %cst_51 = arith.constant dense<0.000000e+00> : vector<64xf32>
    %33 = vector.multi_reduction <add>, %32, %cst_51 [0] : vector<512x64xf32> to vector<64xf32>
    %34 = vector.shape_cast %33 : vector<64xf32> to vector<1x64xf32>
    %35 = vector.extract_strided_slice %31 {offsets = [0, 0], sizes = [1, 32], strides = [1, 1]} : vector<1x64xf32> to vector<1x32xf32>
    %36 = vector.extract_strided_slice %31 {offsets = [0, 32], sizes = [1, 32], strides = [1, 1]} : vector<1x64xf32> to vector<1x32xf32>
    %37 = arith.addf %35, %36 : vector<1x32xf32>
    %38 = vector.extract_strided_slice %34 {offsets = [0, 0], sizes = [1, 32], strides = [1, 1]} : vector<1x64xf32> to vector<1x32xf32>
    %39 = vector.extract_strided_slice %34 {offsets = [0, 32], sizes = [1, 32], strides = [1, 1]} : vector<1x64xf32> to vector<1x32xf32>
    %40 = arith.addf %38, %39 : vector<1x32xf32>
    %cst_52 = arith.constant 1.024000e+03 : f32
    %41 = vector.broadcast %cst_52 : f32 to vector<1x32xf32>
    %42 = arith.divf %37, %41 : vector<1x32xf32>
    %cst_53 = arith.constant 1.024000e+03 : f32
    %43 = vector.broadcast %cst_53 : f32 to vector<1x32xf32>
    %44 = arith.divf %40, %43 : vector<1x32xf32>
    %45 = arith.mulf %42, %42 : vector<1x32xf32>
    %46 = arith.subf %44, %45 : vector<1x32xf32>
    %cst_54 = arith.constant 0.000000e+00 : f32
    %47 = vector.broadcast %cst_54 : f32 to vector<1x32xf32>
    %48 = arith.maximumf %46, %47 : vector<1x32xf32>
    %cst_55 = arith.constant 9.99999974E-6 : f32
    %49 = vector.broadcast %cst_55 : f32 to vector<1x32xf32>
    %50 = arith.addf %48, %49 : vector<1x32xf32>
    %51 = math.rsqrt %50 : vector<1x32xf32>
    %cst_56 = arith.constant 0.000000e+00 : f32
    %52 = vector.broadcast %cst_56 : f32 to vector<1x32xf32>
    %53 = arith.subf %52, %42 : vector<1x32xf32>
    %54 = arith.mulf %53, %51 : vector<1x32xf32>
    %55 = tpu.concatenate %51, %51 in 1 : vector<1x32xf32>, vector<1x32xf32> -> vector<1x64xf32>
    %56 = tpu.concatenate %54, %54 in 1 : vector<1x32xf32>, vector<1x32xf32> -> vector<1x64xf32>
    %57 = vector.broadcast %55 : vector<1x64xf32> to vector<512x64xf32>
    %58 = arith.mulf %29, %57 : vector<512x64xf32>
    %59 = vector.broadcast %56 : vector<1x64xf32> to vector<512x64xf32>
    %60 = arith.addf %58, %59 : vector<512x64xf32>
    %cst_57 = arith.constant 0.000000e+00 : f32
    %61 = vector.broadcast %cst_57 : f32 to vector<512x64xf32>
    %62 = arith.maximumf %60, %61 : vector<512x64xf32>
    %63 = arith.truncf %62 : vector<512x64xf32> to vector<512x64xbf16>
    %c0_58 = arith.constant 0 : index
    %c0_59 = arith.constant 0 : index
    %64 = vector.load %arg4[%c0_58, %c0_59] : memref<512x64xbf16, #tpu.memory_space<vmem>>, vector<512x64xbf16>
    tpu.vector_store %arg4[%c0_58, %c0_59], %63 {strides = array<i32>} : memref<512x64xbf16, #tpu.memory_space<vmem>>, vector<512x64xbf16>,
    return
  }
  func.func @transform_0(%arg0: i32) -> (i32, i32, i32, i32) {
    %c0_i32 = arith.constant 0 : i32
    %c0_i32_0 = arith.constant 0 : i32
    %c0_i32_1 = arith.constant 0 : i32
    %c0_i32_2 = arith.constant 0 : i32
    %c0_i32_3 = arith.constant 0 : i32
    return %c0_i32, %c0_i32_0, %c0_i32_1, %c0_i32_2 : i32, i32, i32, i32
  }
  func.func @transform_1(%arg0: i32) -> (i32, i32) {
    %c0_i32 = arith.constant 0 : i32
    %c0_i32_0 = arith.constant 0 : i32
    %c0_i32_1 = arith.constant 0 : i32
    return %c0_i32, %c0_i32_0 : i32, i32
  }
  func.func @transform_2(%arg0: i32) -> (i32, i32) {
    %c0_i32 = arith.constant 0 : i32
    %c0_i32_0 = arith.constant 0 : i32
    %c0_i32_1 = arith.constant 0 : i32
    return %c0_i32, %c0_i32_0 : i32, i32
  }
  func.func @transform_3(%arg0: i32) -> (i32, i32) {
    %c0_i32 = arith.constant 0 : i32
    %c0_i32_0 = arith.constant 0 : i32
    %c0_i32_1 = arith.constant 0 : i32
    return %c0_i32, %c0_i32_0 : i32, i32
  }
}

module attributes {stable_mosaic.version = 11 : i64} {
  func.func @_fused_conv_kernel(%arg0: i32, %arg1: memref<512x64xbf16, #tpu.memory_space<vmem>>, %arg2: memref<64x64xbf16, #tpu.memory_space<vmem>>, %arg3: memref<1x64xf32, #tpu.memory_space<vmem>>, %arg4: memref<512x64xbf16, #tpu.memory_space<vmem>>) attributes {dimension_semantics = [#tpu.dimension_semantics<arbitrary>], iteration_bounds = array<i64: 1>, scalar_prefetch = 0 : i64, scratch_operands = 0 : i64, tpu.core_type = #tpu.core_type<tc>, window_params = [{pipeline_mode = #tpu.pipeline_mode<synchronous>, transform_indices = @transform_0, window_bounds = array<i64: 512, 64>}, {pipeline_mode = #tpu.pipeline_mode<synchronous>, transform_indices = @transform_1, window_bounds = array<i64: 64, 64>}, {pipeline_mode = #tpu.pipeline_mode<synchronous>, transform_indices = @transform_2, window_bounds = array<i64: 1, 64>}, {pipeline_mode = #tpu.pipeline_mode<synchronous>, transform_indices = @transform_3, window_bounds = array<i64: 512, 64>}]} {
    %c0 = arith.constant 0 : index
    %c0_0 = arith.constant 0 : index
    %0 = vector.load %arg1[%c0, %c0_0] : memref<512x64xbf16, #tpu.memory_space<vmem>>, vector<512x64xbf16>
    %c0_1 = arith.constant 0 : index
    %c0_2 = arith.constant 0 : index
    %1 = vector.load %arg2[%c0_1, %c0_2] : memref<64x64xbf16, #tpu.memory_space<vmem>>, vector<64x64xbf16>
    %cst = arith.constant dense<0.000000e+00> : vector<512x64xf32>
    %2 = tpu.matmul %0, %1, %cst {dimension_numbers = #tpu.dot_dimension_numbers<[1], [0], [0], [1], [0, 0, 1, 1], [], []>} : vector<512x64xbf16>, vector<64x64xbf16>, vector<512x64xf32> -> vector<512x64xf32>
    %c0_3 = arith.constant 0 : index
    %c0_4 = arith.constant 0 : index
    %3 = vector.load %arg3[%c0_3, %c0_4] : memref<1x64xf32, #tpu.memory_space<vmem>>, vector<1x64xf32>
    %4 = vector.broadcast %3 : vector<1x64xf32> to vector<512x64xf32>
    %5 = arith.addf %2, %4 : vector<512x64xf32>
    %cst_5 = arith.constant dense<0.000000e+00> : vector<64xf32>
    %6 = vector.multi_reduction <add>, %5, %cst_5 [0] : vector<512x64xf32> to vector<64xf32>
    %7 = vector.shape_cast %6 : vector<64xf32> to vector<1x64xf32>
    %8 = arith.mulf %5, %5 : vector<512x64xf32>
    %cst_6 = arith.constant dense<0.000000e+00> : vector<64xf32>
    %9 = vector.multi_reduction <add>, %8, %cst_6 [0] : vector<512x64xf32> to vector<64xf32>
    %10 = vector.shape_cast %9 : vector<64xf32> to vector<1x64xf32>
    %11 = vector.extract_strided_slice %7 {offsets = [0, 0], sizes = [1, 32], strides = [1, 1]} : vector<1x64xf32> to vector<1x32xf32>
    %12 = vector.extract_strided_slice %7 {offsets = [0, 32], sizes = [1, 32], strides = [1, 1]} : vector<1x64xf32> to vector<1x32xf32>
    %13 = arith.addf %11, %12 : vector<1x32xf32>
    %14 = vector.extract_strided_slice %10 {offsets = [0, 0], sizes = [1, 32], strides = [1, 1]} : vector<1x64xf32> to vector<1x32xf32>
    %15 = vector.extract_strided_slice %10 {offsets = [0, 32], sizes = [1, 32], strides = [1, 1]} : vector<1x64xf32> to vector<1x32xf32>
    %16 = arith.addf %14, %15 : vector<1x32xf32>
    %cst_7 = arith.constant 1.024000e+03 : f32
    %17 = vector.broadcast %cst_7 : f32 to vector<1x32xf32>
    %18 = arith.divf %13, %17 : vector<1x32xf32>
    %cst_8 = arith.constant 1.024000e+03 : f32
    %19 = vector.broadcast %cst_8 : f32 to vector<1x32xf32>
    %20 = arith.divf %16, %19 : vector<1x32xf32>
    %21 = arith.mulf %18, %18 : vector<1x32xf32>
    %22 = arith.subf %20, %21 : vector<1x32xf32>
    %cst_9 = arith.constant 0.000000e+00 : f32
    %23 = vector.broadcast %cst_9 : f32 to vector<1x32xf32>
    %24 = arith.maximumf %22, %23 : vector<1x32xf32>
    %cst_10 = arith.constant 9.99999974E-6 : f32
    %25 = vector.broadcast %cst_10 : f32 to vector<1x32xf32>
    %26 = arith.addf %24, %25 : vector<1x32xf32>
    %27 = math.rsqrt %26 : vector<1x32xf32>
    %cst_11 = arith.constant 0.000000e+00 : f32
    %28 = vector.broadcast %cst_11 : f32 to vector<1x32xf32>
    %29 = arith.subf %28, %18 : vector<1x32xf32>
    %30 = arith.mulf %29, %27 : vector<1x32xf32>
    %31 = tpu.concatenate %27, %27 in 1 : vector<1x32xf32>, vector<1x32xf32> -> vector<1x64xf32>
    %32 = tpu.concatenate %30, %30 in 1 : vector<1x32xf32>, vector<1x32xf32> -> vector<1x64xf32>
    %33 = vector.broadcast %31 : vector<1x64xf32> to vector<512x64xf32>
    %34 = arith.mulf %5, %33 : vector<512x64xf32>
    %35 = vector.broadcast %32 : vector<1x64xf32> to vector<512x64xf32>
    %36 = arith.addf %34, %35 : vector<512x64xf32>
    %cst_12 = arith.constant 0.000000e+00 : f32
    %37 = vector.broadcast %cst_12 : f32 to vector<512x64xf32>
    %38 = arith.maximumf %36, %37 : vector<512x64xf32>
    %39 = arith.truncf %38 : vector<512x64xf32> to vector<512x64xbf16>
    %c0_13 = arith.constant 0 : index
    %c0_14 = arith.constant 0 : index
    %40 = vector.load %arg4[%c0_13, %c0_14] : memref<512x64xbf16, #tpu.memory_space<vmem>>, vector<512x64xbf16>
    tpu.vector_store %arg4[%c0_13, %c0_14], %39 {strides = array<i32>} : memref<512x64xbf16, #tpu.memory_space<vmem>>, vector<512x64xbf16>,
    return
  }
  func.func @transform_0(%arg0: i32) -> (i32, i32) {
    %c0_i32 = arith.constant 0 : i32
    %c0_i32_0 = arith.constant 0 : i32
    %c0_i32_1 = arith.constant 0 : i32
    return %c0_i32, %c0_i32_0 : i32, i32
  }
  func.func @transform_1(%arg0: i32) -> (i32, i32) {
    %c0_i32 = arith.constant 0 : i32
    %c0_i32_0 = arith.constant 0 : i32
    %c0_i32_1 = arith.constant 0 : i32
    return %c0_i32, %c0_i32_0 : i32, i32
  }
  func.func @transform_2(%arg0: i32) -> (i32, i32) {
    %c0_i32 = arith.constant 0 : i32
    %c0_i32_0 = arith.constant 0 : i32
    %c0_i32_1 = arith.constant 0 : i32
    return %c0_i32, %c0_i32_0 : i32, i32
  }
  func.func @transform_3(%arg0: i32) -> (i32, i32) {
    %c0_i32 = arith.constant 0 : i32
    %c0_i32_0 = arith.constant 0 : i32
    %c0_i32_1 = arith.constant 0 : i32
    return %c0_i32, %c0_i32_0 : i32, i32
  }
}

module attributes {stable_mosaic.version = 11 : i64} {
  func.func @_pred_head_kernel(%arg0: i32, %arg1: memref<512x64xbf16, #tpu.memory_space<vmem>>, %arg2: memref<1x288x32xbf16, #tpu.memory_space<vmem>>, %arg3: memref<1x288x1xbf16, #tpu.memory_space<vmem>>, %arg4: memref<1x1x1xf32, #tpu.memory_space<vmem>>, %arg5: memref<512x1xf32, #tpu.memory_space<vmem>>, %arg6: memref<2x18x18x32xf32, #tpu.memory_space<vmem>>) attributes {dimension_semantics = [#tpu.dimension_semantics<parallel>], iteration_bounds = array<i64: 2>, scalar_prefetch = 0 : i64, scratch_operands = 1 : i64, tpu.core_type = #tpu.core_type<tc>, window_params = [{pipeline_mode = #tpu.pipeline_mode<synchronous>, transform_indices = @transform_0, window_bounds = array<i64: 512, 64>}, {transform_indices = @transform_1, window_bounds = array<i64: 1, 288, 32>}, {transform_indices = @transform_2, window_bounds = array<i64: 1, 288, 1>}, {transform_indices = @transform_3, window_bounds = array<i64: 1, 1, 1>}, {transform_indices = @transform_4, window_bounds = array<i64: 512, 1>}]} {
    %c0_i32 = arith.constant 0 : i32
    %0 = arith.cmpi eq, %arg0, %c0_i32 : i32
    %c0 = arith.constant 0 : index
    %c0_0 = arith.constant 0 : index
    %1 = vector.load %arg1[%c0, %c0_0] : memref<512x64xbf16, #tpu.memory_space<vmem>>, vector<512x32xbf16>
    %c0_1 = arith.constant 0 : index
    %c32 = arith.constant 32 : index
    %2 = vector.load %arg1[%c0_1, %c32] : memref<512x64xbf16, #tpu.memory_space<vmem>>, vector<512x32xbf16>
    %3 = arith.select %0, %1, %2 : vector<512x32xbf16>
    %cst = arith.constant 0.000000e+00 : f32
    %4 = vector.broadcast %cst : f32 to vector<2x18x18x32xf32>
    %c0_2 = arith.constant 0 : index
    %c0_3 = arith.constant 0 : index
    %c0_4 = arith.constant 0 : index
    %c0_5 = arith.constant 0 : index
    %5 = vector.load %arg6[%c0_2, %c0_3, %c0_4, %c0_5] : memref<2x18x18x32xf32, #tpu.memory_space<vmem>>, vector<2x18x18x32xf32>
    tpu.vector_store %arg6[%c0_2, %c0_3, %c0_4, %c0_5], %4 {strides = array<i32>} : memref<2x18x18x32xf32, #tpu.memory_space<vmem>>, vector<2x18x18x32xf32>,
    %6 = vector.shape_cast %3 : vector<512x32xbf16> to vector<2x16x16x32xbf16>
    %7 = arith.extf %6 : vector<2x16x16x32xbf16> to vector<2x16x16x32xf32>
    %c0_6 = arith.constant 0 : index
    %c1 = arith.constant 1 : index
    %c1_7 = arith.constant 1 : index
    %c0_8 = arith.constant 0 : index
    %8 = vector.load %arg6[%c0_6, %c1, %c1_7, %c0_8] : memref<2x18x18x32xf32, #tpu.memory_space<vmem>>, vector<2x16x16x32xf32>
    tpu.vector_store %arg6[%c0_6, %c1, %c1_7, %c0_8], %7 {strides = array<i32>} : memref<2x18x18x32xf32, #tpu.memory_space<vmem>>, vector<2x16x16x32xf32>,
    %c0_9 = arith.constant 0 : index
    %c0_10 = arith.constant 0 : index
    %c0_11 = arith.constant 0 : index
    %c0_12 = arith.constant 0 : index
    %9 = vector.load %arg6[%c0_9, %c0_10, %c0_11, %c0_12] : memref<2x18x18x32xf32, #tpu.memory_space<vmem>>, vector<2x16x16x32xf32>
    %10 = vector.shape_cast %9 : vector<2x16x16x32xf32> to vector<512x32xf32>
    %c0_13 = arith.constant 0 : index
    %c0_14 = arith.constant 0 : index
    %c1_15 = arith.constant 1 : index
    %c0_16 = arith.constant 0 : index
    %11 = vector.load %arg6[%c0_13, %c0_14, %c1_15, %c0_16] : memref<2x18x18x32xf32, #tpu.memory_space<vmem>>, vector<2x16x16x32xf32>
    %12 = vector.shape_cast %11 : vector<2x16x16x32xf32> to vector<512x32xf32>
    %c0_17 = arith.constant 0 : index
    %c0_18 = arith.constant 0 : index
    %c2 = arith.constant 2 : index
    %c0_19 = arith.constant 0 : index
    %13 = vector.load %arg6[%c0_17, %c0_18, %c2, %c0_19] : memref<2x18x18x32xf32, #tpu.memory_space<vmem>>, vector<2x16x16x32xf32>
    %14 = vector.shape_cast %13 : vector<2x16x16x32xf32> to vector<512x32xf32>
    %c0_20 = arith.constant 0 : index
    %c1_21 = arith.constant 1 : index
    %c0_22 = arith.constant 0 : index
    %c0_23 = arith.constant 0 : index
    %15 = vector.load %arg6[%c0_20, %c1_21, %c0_22, %c0_23] : memref<2x18x18x32xf32, #tpu.memory_space<vmem>>, vector<2x16x16x32xf32>
    %16 = vector.shape_cast %15 : vector<2x16x16x32xf32> to vector<512x32xf32>
    %c0_24 = arith.constant 0 : index
    %c1_25 = arith.constant 1 : index
    %c1_26 = arith.constant 1 : index
    %c0_27 = arith.constant 0 : index
    %17 = vector.load %arg6[%c0_24, %c1_25, %c1_26, %c0_27] : memref<2x18x18x32xf32, #tpu.memory_space<vmem>>, vector<2x16x16x32xf32>
    %18 = vector.shape_cast %17 : vector<2x16x16x32xf32> to vector<512x32xf32>
    %c0_28 = arith.constant 0 : index
    %c1_29 = arith.constant 1 : index
    %c2_30 = arith.constant 2 : index
    %c0_31 = arith.constant 0 : index
    %19 = vector.load %arg6[%c0_28, %c1_29, %c2_30, %c0_31] : memref<2x18x18x32xf32, #tpu.memory_space<vmem>>, vector<2x16x16x32xf32>
    %20 = vector.shape_cast %19 : vector<2x16x16x32xf32> to vector<512x32xf32>
    %c0_32 = arith.constant 0 : index
    %c2_33 = arith.constant 2 : index
    %c0_34 = arith.constant 0 : index
    %c0_35 = arith.constant 0 : index
    %21 = vector.load %arg6[%c0_32, %c2_33, %c0_34, %c0_35] : memref<2x18x18x32xf32, #tpu.memory_space<vmem>>, vector<2x16x16x32xf32>
    %22 = vector.shape_cast %21 : vector<2x16x16x32xf32> to vector<512x32xf32>
    %c0_36 = arith.constant 0 : index
    %c2_37 = arith.constant 2 : index
    %c1_38 = arith.constant 1 : index
    %c0_39 = arith.constant 0 : index
    %23 = vector.load %arg6[%c0_36, %c2_37, %c1_38, %c0_39] : memref<2x18x18x32xf32, #tpu.memory_space<vmem>>, vector<2x16x16x32xf32>
    %24 = vector.shape_cast %23 : vector<2x16x16x32xf32> to vector<512x32xf32>
    %c0_40 = arith.constant 0 : index
    %c2_41 = arith.constant 2 : index
    %c2_42 = arith.constant 2 : index
    %c0_43 = arith.constant 0 : index
    %25 = vector.load %arg6[%c0_40, %c2_41, %c2_42, %c0_43] : memref<2x18x18x32xf32, #tpu.memory_space<vmem>>, vector<2x16x16x32xf32>
    %26 = vector.shape_cast %25 : vector<2x16x16x32xf32> to vector<512x32xf32>
    %27 = tpu.concatenate %10, %12, %14, %16, %18, %20, %22, %24, %26 in 1 : vector<512x32xf32>, vector<512x32xf32>, vector<512x32xf32>, vector<512x32xf32>, vector<512x32xf32>, vector<512x32xf32>, vector<512x32xf32>, vector<512x32xf32>, vector<512x32xf32> -> vector<512x288xf32>
    %28 = arith.truncf %27 : vector<512x288xf32> to vector<512x288xbf16>
    %c0_44 = arith.constant 0 : index
    %c0_45 = arith.constant 0 : index
    %c0_46 = arith.constant 0 : index
    %29 = vector.load %arg2[%c0_44, %c0_45, %c0_46] : memref<1x288x32xbf16, #tpu.memory_space<vmem>>, vector<1x288x32xbf16>
    %30 = vector.shape_cast %29 : vector<1x288x32xbf16> to vector<288x32xbf16>
    %cst_47 = arith.constant dense<0.000000e+00> : vector<512x32xf32>
    %31 = tpu.matmul %28, %30, %cst_47 {dimension_numbers = #tpu.dot_dimension_numbers<[1], [0], [0], [1], [0, 0, 1, 1], [], []>} : vector<512x288xbf16>, vector<288x32xbf16>, vector<512x32xf32> -> vector<512x32xf32>
    %cst_48 = arith.constant dense<0.000000e+00> : vector<32xf32>
    %32 = vector.multi_reduction <add>, %31, %cst_48 [0] : vector<512x32xf32> to vector<32xf32>
    %33 = vector.shape_cast %32 : vector<32xf32> to vector<1x32xf32>
    %34 = arith.mulf %31, %31 : vector<512x32xf32>
    %cst_49 = arith.constant dense<0.000000e+00> : vector<32xf32>
    %35 = vector.multi_reduction <add>, %34, %cst_49 [0] : vector<512x32xf32> to vector<32xf32>
    %36 = vector.shape_cast %35 : vector<32xf32> to vector<1x32xf32>
    %cst_50 = arith.constant 5.120000e+02 : f32
    %37 = vector.broadcast %cst_50 : f32 to vector<1x32xf32>
    %38 = arith.divf %33, %37 : vector<1x32xf32>
    %cst_51 = arith.constant 5.120000e+02 : f32
    %39 = vector.broadcast %cst_51 : f32 to vector<1x32xf32>
    %40 = arith.divf %36, %39 : vector<1x32xf32>
    %41 = arith.mulf %38, %38 : vector<1x32xf32>
    %42 = arith.subf %40, %41 : vector<1x32xf32>
    %cst_52 = arith.constant 0.000000e+00 : f32
    %43 = vector.broadcast %cst_52 : f32 to vector<1x32xf32>
    %44 = arith.maximumf %42, %43 : vector<1x32xf32>
    %45 = vector.broadcast %38 : vector<1x32xf32> to vector<512x32xf32>
    %46 = arith.subf %31, %45 : vector<512x32xf32>
    %cst_53 = arith.constant 9.99999974E-6 : f32
    %47 = vector.broadcast %cst_53 : f32 to vector<1x32xf32>
    %48 = arith.addf %44, %47 : vector<1x32xf32>
    %49 = math.rsqrt %48 : vector<1x32xf32>
    %50 = vector.broadcast %49 : vector<1x32xf32> to vector<512x32xf32>
    %51 = arith.mulf %46, %50 : vector<512x32xf32>
    %cst_54 = arith.constant 0.000000e+00 : f32
    %52 = vector.broadcast %cst_54 : f32 to vector<512x32xf32>
    %53 = arith.maximumf %51, %52 : vector<512x32xf32>
    %54 = vector.shape_cast %53 : vector<512x32xf32> to vector<2x16x16x32xf32>
    %c0_55 = arith.constant 0 : index
    %c1_56 = arith.constant 1 : index
    %c1_57 = arith.constant 1 : index
    %c0_58 = arith.constant 0 : index
    %55 = vector.load %arg6[%c0_55, %c1_56, %c1_57, %c0_58] : memref<2x18x18x32xf32, #tpu.memory_space<vmem>>, vector<2x16x16x32xf32>
    tpu.vector_store %arg6[%c0_55, %c1_56, %c1_57, %c0_58], %54 {strides = array<i32>} : memref<2x18x18x32xf32, #tpu.memory_space<vmem>>, vector<2x16x16x32xf32>,
    %c0_59 = arith.constant 0 : index
    %c0_60 = arith.constant 0 : index
    %c0_61 = arith.constant 0 : index
    %c0_62 = arith.constant 0 : index
    %56 = vector.load %arg6[%c0_59, %c0_60, %c0_61, %c0_62] : memref<2x18x18x32xf32, #tpu.memory_space<vmem>>, vector<2x16x16x32xf32>
    %57 = vector.shape_cast %56 : vector<2x16x16x32xf32> to vector<512x32xf32>
    %c0_63 = arith.constant 0 : index
    %c0_64 = arith.constant 0 : index
    %c1_65 = arith.constant 1 : index
    %c0_66 = arith.constant 0 : index
    %58 = vector.load %arg6[%c0_63, %c0_64, %c1_65, %c0_66] : memref<2x18x18x32xf32, #tpu.memory_space<vmem>>, vector<2x16x16x32xf32>
    %59 = vector.shape_cast %58 : vector<2x16x16x32xf32> to vector<512x32xf32>
    %c0_67 = arith.constant 0 : index
    %c0_68 = arith.constant 0 : index
    %c2_69 = arith.constant 2 : index
    %c0_70 = arith.constant 0 : index
    %60 = vector.load %arg6[%c0_67, %c0_68, %c2_69, %c0_70] : memref<2x18x18x32xf32, #tpu.memory_space<vmem>>, vector<2x16x16x32xf32>
    %61 = vector.shape_cast %60 : vector<2x16x16x32xf32> to vector<512x32xf32>
    %c0_71 = arith.constant 0 : index
    %c1_72 = arith.constant 1 : index
    %c0_73 = arith.constant 0 : index
    %c0_74 = arith.constant 0 : index
    %62 = vector.load %arg6[%c0_71, %c1_72, %c0_73, %c0_74] : memref<2x18x18x32xf32, #tpu.memory_space<vmem>>, vector<2x16x16x32xf32>
    %63 = vector.shape_cast %62 : vector<2x16x16x32xf32> to vector<512x32xf32>
    %c0_75 = arith.constant 0 : index
    %c1_76 = arith.constant 1 : index
    %c1_77 = arith.constant 1 : index
    %c0_78 = arith.constant 0 : index
    %64 = vector.load %arg6[%c0_75, %c1_76, %c1_77, %c0_78] : memref<2x18x18x32xf32, #tpu.memory_space<vmem>>, vector<2x16x16x32xf32>
    %65 = vector.shape_cast %64 : vector<2x16x16x32xf32> to vector<512x32xf32>
    %c0_79 = arith.constant 0 : index
    %c1_80 = arith.constant 1 : index
    %c2_81 = arith.constant 2 : index
    %c0_82 = arith.constant 0 : index
    %66 = vector.load %arg6[%c0_79, %c1_80, %c2_81, %c0_82] : memref<2x18x18x32xf32, #tpu.memory_space<vmem>>, vector<2x16x16x32xf32>
    %67 = vector.shape_cast %66 : vector<2x16x16x32xf32> to vector<512x32xf32>
    %c0_83 = arith.constant 0 : index
    %c2_84 = arith.constant 2 : index
    %c0_85 = arith.constant 0 : index
    %c0_86 = arith.constant 0 : index
    %68 = vector.load %arg6[%c0_83, %c2_84, %c0_85, %c0_86] : memref<2x18x18x32xf32, #tpu.memory_space<vmem>>, vector<2x16x16x32xf32>
    %69 = vector.shape_cast %68 : vector<2x16x16x32xf32> to vector<512x32xf32>
    %c0_87 = arith.constant 0 : index
    %c2_88 = arith.constant 2 : index
    %c1_89 = arith.constant 1 : index
    %c0_90 = arith.constant 0 : index
    %70 = vector.load %arg6[%c0_87, %c2_88, %c1_89, %c0_90] : memref<2x18x18x32xf32, #tpu.memory_space<vmem>>, vector<2x16x16x32xf32>
    %71 = vector.shape_cast %70 : vector<2x16x16x32xf32> to vector<512x32xf32>
    %c0_91 = arith.constant 0 : index
    %c2_92 = arith.constant 2 : index
    %c2_93 = arith.constant 2 : index
    %c0_94 = arith.constant 0 : index
    %72 = vector.load %arg6[%c0_91, %c2_92, %c2_93, %c0_94] : memref<2x18x18x32xf32, #tpu.memory_space<vmem>>, vector<2x16x16x32xf32>
    %73 = vector.shape_cast %72 : vector<2x16x16x32xf32> to vector<512x32xf32>
    %74 = tpu.concatenate %57, %59, %61, %63, %65, %67, %69, %71, %73 in 1 : vector<512x32xf32>, vector<512x32xf32>, vector<512x32xf32>, vector<512x32xf32>, vector<512x32xf32>, vector<512x32xf32>, vector<512x32xf32>, vector<512x32xf32>, vector<512x32xf32> -> vector<512x288xf32>
    %75 = arith.truncf %74 : vector<512x288xf32> to vector<512x288xbf16>
    %c0_95 = arith.constant 0 : index
    %c0_96 = arith.constant 0 : index
    %c0_97 = arith.constant 0 : index
    %76 = vector.load %arg3[%c0_95, %c0_96, %c0_97] : memref<1x288x1xbf16, #tpu.memory_space<vmem>>, vector<1x288x1xbf16>
    %77 = vector.shape_cast %76 : vector<1x288x1xbf16> to vector<288x1xbf16>
    %cst_98 = arith.constant dense<0.000000e+00> : vector<512x1xf32>
    %78 = tpu.matmul %75, %77, %cst_98 {dimension_numbers = #tpu.dot_dimension_numbers<[1], [0], [0], [1], [0, 0, 1, 1], [], []>} : vector<512x288xbf16>, vector<288x1xbf16>, vector<512x1xf32> -> vector<512x1xf32>
    %c0_99 = arith.constant 0 : index
    %c0_100 = arith.constant 0 : index
    %c0_101 = arith.constant 0 : index
    %79 = vector.load %arg4[%c0_99, %c0_100, %c0_101] : memref<1x1x1xf32, #tpu.memory_space<vmem>>, vector<1x1x1xf32>
    %80 = vector.shape_cast %79 : vector<1x1x1xf32> to vector<1x1xf32>
    %81 = vector.broadcast %80 : vector<1x1xf32> to vector<512x1xf32>
    %82 = arith.addf %78, %81 : vector<512x1xf32>
    %c0_102 = arith.constant 0 : index
    %c0_103 = arith.constant 0 : index
    %83 = vector.load %arg5[%c0_102, %c0_103] : memref<512x1xf32, #tpu.memory_space<vmem>>, vector<512x1xf32>
    tpu.vector_store %arg5[%c0_102, %c0_103], %82 {strides = array<i32>} : memref<512x1xf32, #tpu.memory_space<vmem>>, vector<512x1xf32>,
    return
  }
  func.func @transform_0(%arg0: i32) -> (i32, i32) {
    %c0_i32 = arith.constant 0 : i32
    %c0_i32_0 = arith.constant 0 : i32
    %c0_i32_1 = arith.constant 0 : i32
    return %c0_i32, %c0_i32_0 : i32, i32
  }
  func.func @transform_1(%arg0: i32) -> (i32, i32, i32) {
    %c0_i32 = arith.constant 0 : i32
    %c0_i32_0 = arith.constant 0 : i32
    %c0_i32_1 = arith.constant 0 : i32
    return %arg0, %c0_i32, %c0_i32_0 : i32, i32, i32
  }
  func.func @transform_2(%arg0: i32) -> (i32, i32, i32) {
    %c0_i32 = arith.constant 0 : i32
    %c0_i32_0 = arith.constant 0 : i32
    %c0_i32_1 = arith.constant 0 : i32
    return %arg0, %c0_i32, %c0_i32_0 : i32, i32, i32
  }
  func.func @transform_3(%arg0: i32) -> (i32, i32, i32) {
    %c0_i32 = arith.constant 0 : i32
    %c0_i32_0 = arith.constant 0 : i32
    %c0_i32_1 = arith.constant 0 : i32
    return %arg0, %c0_i32, %c0_i32_0 : i32, i32, i32
  }
  func.func @transform_4(%arg0: i32) -> (i32, i32) {
    %c0_i32 = arith.constant 0 : i32
    %c0_i32_0 = arith.constant 0 : i32
    return %arg0, %c0_i32 : i32, i32
  }
}

</mosaic_0001>

<bundles_post_ra>
// kernel: squeeze.2
= control target key start
LH: loop header
LB: loop body
LE: loop exit
PB: predicated region body
PF: predicated region fallthrough
CT: control target
= control target key end

     0   :  { %s135_s0 = inlined_call_operand.vmem [shape: f32[512], index: 0, kind: input, shape index: {}]   ;;  %s136_s1 = inlined_call_operand.hbm [shape: f32[2,1,16,16], index: 1, kind: output, shape index: {}]  }
   0x1   :  { %v5_v0 = vld [vmem:[%s135_s0] sm:$0xf] }
   0x2   :  { %6 = vst [vmem:[#allocation2] sm:$0xf] %v5_v0 }
   0x3   :  { %2 = vsyncpa [#allocation1], 0  ;;  %s94_s0 = smov 112   ;;  %s95_s8 = smov 80   ;;  %vm8_vm0 = vcmask 130048  }
   0x4   :  { %s96_s9 = smov 96   ;;  %s97_s10 = smov 64  }
   0x5   :  { %s98_s11 = smov 48   ;;  %s99_s12 = smov 32  }
   0x6   :  { %s100_s13 = smov 16   ;;  %s101_s14 = smov [#allocation0]  }
   0x7   :  { %s56_s15 = sshll.u32 %s101_s14, 4  ;;  %s57_s15 = int_to_ptr.vmem [resolvable:$true] %s56_s15 }
   0x8   :  { %s70_s16 = scalar_lea.vmem %s57_s15, 512  ;;  %p75_p1 = scmp.lt.s32.totalorder %s57_s15, %s57_s15 }
   0x9   :  { %v10_v1 = vld [vmem:[#allocation2] sm:$0xf]   ;;  %p71_p0 = scmp.ne.s32.totalorder %s57_s15, %s70_s16  ;;  %p76_p2 = scmp.lt.s32.totalorder %s70_s16, %s70_s16 }
   0xa   :  { %v22_v2 = vld [vmem:[#allocation2] sm:$0xf]   ;;  %11 = vrot.lane.b32.xlu0 %v10_v1, %s94_s0 }
   0xb   :  { %23 = vrot.lane.b32.xlu1 %v22_v2, %s95_s8  ;;  %v16_v3 = vld [vmem:[#allocation2] sm:$0xf]   ;;  %p77_p3 = por %p76_p2, %p75_p1 }
   0xc   :  { %v28_v4 = vld [vmem:[#allocation2] sm:$0xf]  }
   0xd   :  { %v7_v5 = vld [vmem:[#allocation2] sm:$0xf]   ;;  %p78_p4 = pnand %p77_p3, %p71_p0 }
   0xe   :  { %9 = vst.msk [vmem:[#allocation0] ss:$8 sm:$0xf] %vm8_vm0, %v7_v5   ;;  %17 = vrot.lane.b32.xlu0 %v16_v3, %s96_s9  ;;  %v34_v6 = vld [vmem:[#allocation2] sm:$0xf]  }
   0xf   :  { %29 = vrot.lane.b32.xlu1 %v28_v4, %s97_s10  ;;  %v40_v7 = vld [vmem:[#allocation2] sm:$0xf]  }
  0x10   :  { %v46_v8 = vld [vmem:[#allocation2] sm:$0xf]  }
  0x12   :  { %35 = vrot.lane.b32.xlu0 %v34_v6, %s98_s11 }
  0x13   :  { %41 = vrot.lane.b32.xlu1 %v40_v7, %s99_s12 }
  0x16   :  { %47 = vrot.lane.b32.xlu0 %v46_v8, %s100_s13 }
  0x7c   :  { %v12_v9 = vpop.permute.xlu0 %11  }
  0x7d   :  { %v24_v10 = vpop.permute.xlu1 %23   ;;  %15 = vst.msk [vmem:[#allocation0 + $0x1] ss:$8 sm:$0xf] %vm8_vm0, %v12_v9  }
  0x7e   :  { %27 = vst.msk [vmem:[#allocation0 + $0x3] ss:$8 sm:$0xf] %vm8_vm0, %v24_v10  }
  0x80   :  { %v18_v11 = vpop.permute.xlu0 %17  }
  0x81   :  { %v30_v12 = vpop.permute.xlu1 %29   ;;  %21 = vst.msk [vmem:[#allocation0 + $0x2] ss:$8 sm:$0xf] %vm8_vm0, %v18_v11  }
  0x82   :  { %33 = vst.msk [vmem:[#allocation0 + $0x4] ss:$8 sm:$0xf] %vm8_vm0, %v30_v12  }
  0x84   :  { %v36_v13 = vpop.permute.xlu0 %35  }
  0x85   :  { %v42_v14 = vpop.permute.xlu1 %41   ;;  %39 = vst.msk [vmem:[#allocation0 + $0x5] ss:$8 sm:$0xf] %vm8_vm0, %v36_v13  }
  0x86   :  { %45 = vst.msk [vmem:[#allocation0 + $0x6] ss:$8 sm:$0xf] %vm8_vm0, %v42_v14  }
  0x88   :  { %v48_v15 = vpop.permute.xlu0 %47  }
  0x89   :  { %51 = vst.msk [vmem:[#allocation0 + $0x7] ss:$8 sm:$0xf] %vm8_vm0, %v48_v15  }
  0x8a   :  { %81 = shalt.err (!%p78_p4)
}
  0x8b   :  { %s82_s19 = scalar_lea.hbm %s136_s1, 512 }
  0x8c   :  { %p83_p5 = scmp.ne.s32.totalorder %s136_s1, %s82_s19  ;;  %p86_p6 = scmp.lt.u32.totalorder %s82_s19, %s136_s1 }
  0x8e   :  { %p88_p7 = pnand %p86_p6, %p83_p5 }
  0x90   :  { %91 = shalt.err (!%p88_p7)
}
  0x91   :  { %59 = dma.vmem_to_hbm [thread:$0]  %s57_s15, 512, %s136_s1, [#allocation1]  }
  0x92   :  { %92 = dma.done.wait [#allocation1], 512  }
  0x93   :  { %93 = vsyncadd [#allocation1], 4294966784 }
  0x94   :  { %61 = vsyncpa [#allocation1], 1 }

</bundles_post_ra>
